<compile_context>
chip_gen: v7x
topology: tpu7x:2x2x1
jax: 0.10.0
libtpu: 0.0.40
codegen_flags: <defaults>
</compile_context>

<pallas_src>
import functools

import jax
import jax.numpy as jnp
from jax.experimental import pallas as pl
from jax.experimental.pallas import tpu as pltpu


_CPARAMS_GRID = pltpu.CompilerParams(
    dimension_semantics=("arbitrary",),
    vmem_limit_bytes=8 * 1024 * 1024,
)
_CPARAMS_NOGRID = pltpu.CompilerParams(vmem_limit_bytes=8 * 1024 * 1024)


# ----------------------------------------------------------------------------
# Kernel 1: fused embedding + all MPNN layers.
#   grid=(DEPTH,): iteration d computes layer d.  d==0 additionally runs the
#   node/edge embedding (Linear + LeakyReLU) and primes the VMEM scratch.
# ----------------------------------------------------------------------------
def _mpnn_fused_kernel(
        node_in_ref, edge_in_ref,                       # raw inputs
        wn_ref, bn_ref, we_ref, be_ref,                 # embedding linears
        srcoh_ref, inc_ref, r_ref, s_ref,               # graph ops + R/S consts
        wgate_ref, bgate_ref,                           # shared residual gate
        w1_ref, b1_ref, w2_ref, b2_ref,                 # per-depth edge net
        wg_ref, bg_ref, gamma_ref, beta_ref,            # per-depth GRU + LN
        emb_out_ref, layer_out_ref,                     # outputs
        node_sc, h0_sc, edge_sc,                        # VMEM scratch
        *, hidden_dim):
    h_dim = hidden_dim
    bf = jnp.bfloat16
    d = pl.program_id(0)

    # --- depth 0: embed nodes/edges (Linear + LeakyReLU, slope 0.01) ---------
    @pl.when(d == 0)
    def _():
        yn = jnp.dot(node_in_ref[...], wn_ref[...],
                     preferred_element_type=jnp.float32) + bn_ref[...]
        nemb = jnp.where(yn > 0, yn, 0.01 * yn)
        ye = jnp.dot(edge_in_ref[...], we_ref[...],
                     preferred_element_type=jnp.float32) + be_ref[...]
        eemb = jnp.where(ye > 0, ye, 0.01 * ye)
        node_sc[...] = nemb           # running node features
        h0_sc[...] = nemb             # GRU hidden + residual input (constant)
        edge_sc[...] = eemb           # embedded edge features (constant)
        emb_out_ref[...] = nemb

    node = node_sc[...]               # (V, H)
    h0 = h0_sc[...]                   # (V, H)
    edge = edge_sc[...]               # (E, H)

    w1 = w1_ref[0]                    # (H, 2H)   bf16
    b1 = b1_ref[0]                    # (1, 2H)   f32
    w2 = w2_ref[0]                    # (2H, H*H) bf16
    b2 = b2_ref[0]                    # (1, H*H)  f32
    wg = wg_ref[0]                    # (2H, 4H)  bf16
    bg = bg_ref[0]                    # (1, 4H)   f32
    gamma = gamma_ref[0]              # (1, H)
    beta = beta_ref[0]                # (1, H)

    # --- edge network: relu(edge @ W1 + b1) @ W2 + b2  -> (E, H*H) lane-dense
    e1 = jnp.maximum(
        jnp.dot(edge.astype(bf), w1, preferred_element_type=jnp.float32) + b1,
        0.0)
    ew = jnp.dot(e1.astype(bf), w2, preferred_element_type=jnp.float32) + b2

    # --- gather src node features via one-hot matmul on the MXU: (E,V)@(V,H)
    src_feats = jnp.dot(srcoh_ref[...], node.astype(bf),
                        preferred_element_type=jnp.float32)        # (E, H)

    # --- per-edge mat-vec on the MXU (no unrolled VALU loop):
    #   A[e, h*H+k] = src[e, h]    (R = kron(I_H, ones(1,H)))
    #   mail[e, k]  = sum_h A[e,h*H+k] * ew[e,h*H+k]   via S = stacked I_H
    a = jnp.dot(src_feats.astype(bf), r_ref[...],
                preferred_element_type=jnp.float32)                # (E, H*H)
    mail = jnp.dot((a * ew).astype(bf), s_ref[...],
                   preferred_element_type=jnp.float32)             # (E, H)

    # --- sum over incoming edges (dst incidence matmul) + ReLU (no batch_norm)
    x = jnp.maximum(jnp.dot(inc_ref[...], mail.astype(bf),
                            preferred_element_type=jnp.float32), 0.0)  # (V, H)

    # --- GRUCell: single [x | h0] concat, column-stacked weights [r|z|i_n|h_n]
    xh = jnp.concatenate([x, h0], axis=-1)                         # (V, 2H)
    g = jnp.dot(xh.astype(bf), wg, preferred_element_type=jnp.float32) + bg
    r = jax.nn.sigmoid(g[:, 0:h_dim])
    z = jax.nn.sigmoid(g[:, h_dim:2 * h_dim])
    n = jnp.tanh(g[:, 2 * h_dim:3 * h_dim] + r * g[:, 3 * h_dim:4 * h_dim])
    out = (1.0 - z) * n + z * h0

    # --- LayerNorm (eps = 1e-5)
    mu = jnp.mean(out, axis=-1, keepdims=True)
    var = jnp.mean((out - mu) ** 2, axis=-1, keepdims=True)
    out = (out - mu) * jax.lax.rsqrt(var + 1e-5) * gamma + beta

    # --- residual gate: sigmoid(linear_gate([out, h0])) convex combination
    oh = jnp.concatenate([out, h0], axis=-1)                       # (V, 2H)
    zg = jax.nn.sigmoid(
        jnp.dot(oh.astype(bf), wgate_ref[...],
                preferred_element_type=jnp.float32) + bgate_ref[...])
    new_node = zg * out + (1.0 - zg) * h0

    node_sc[...] = new_node
    layer_out_ref[0] = new_node.astype(layer_out_ref.dtype)


def mpnn_layers_fused(node_in, edge_in, params, src_onehot, incidence,
                      depth, hidden_dim):
    v, f_n = node_in.shape
    e, f_e = edge_in.shape
    h = hidden_dim
    bf = jnp.bfloat16

    wn, bn = params["emb_node"]
    we, be = params["emb_edge"]
    wgate, bgate = params["linear_gate"]
    st = params["layers_stacked"]

    # constant 0/1 matrices for the per-edge mat-vec reformulation
    r_mat = jnp.kron(jnp.eye(h, dtype=jnp.float32),
                     jnp.ones((1, h), jnp.float32)).astype(bf)      # (H, H*H)
    s_mat = jnp.tile(jnp.eye(h, dtype=jnp.float32), (h, 1)).astype(bf)  # (H*H, H)

    def full(shape):
        return pl.BlockSpec(shape, lambda d, _s=shape: (0,) * len(_s))

    def per_depth(shape):
        return pl.BlockSpec((1,) + shape,
                            lambda d, _s=shape: (d,) + (0,) * len(_s))

    in_specs = [
        full((v, f_n)), full((e, f_e)),
        full((f_n, h)), full((1, h)), full((f_e, h)), full((1, h)),
        full((e, v)), full((v, e)), full((h, h * h)), full((h * h, h)),
        full((2 * h, h)), full((1, h)),
        per_depth((h, 2 * h)), per_depth((1, 2 * h)),
        per_depth((2 * h, h * h)), per_depth((1, h * h)),
        per_depth((2 * h, 4 * h)), per_depth((1, 4 * h)),
        per_depth((1, h)), per_depth((1, h)),
    ]
    out_specs = (
        pl.BlockSpec((v, h), lambda d: (0, 0)),          # embedded nodes
        pl.BlockSpec((1, v, h), lambda d: (d, 0, 0)),    # per-layer outputs
    )
    out_shape = (
        jax.ShapeDtypeStruct((v, h), jnp.float32),
        jax.ShapeDtypeStruct((depth, v, h), jnp.float32),
    )

    emb_out, layer_out = pl.pallas_call(
        functools.partial(_mpnn_fused_kernel, hidden_dim=h),
        grid=(depth,),
        in_specs=in_specs,
        out_specs=out_specs,
        out_shape=out_shape,
        scratch_shapes=[pltpu.VMEM((v, h), jnp.float32),   # node state
                        pltpu.VMEM((v, h), jnp.float32),   # h0 (embedding)
                        pltpu.VMEM((e, h), jnp.float32)],  # embedded edges
        compiler_params=_CPARAMS_GRID,
    )(node_in, edge_in,
      wn, bn, we, be,
      src_onehot, incidence, r_mat, s_mat,
      wgate.astype(bf), bgate,
      st["w1"].astype(bf), st["b1"],
      st["w2"].astype(bf), st["b2"],
      st["wg"].astype(bf), st["bg"],
      st["gamma"], st["beta"])
    return emb_out, layer_out


# ----------------------------------------------------------------------------
# Kernel 2: fused prediction head (Linear + ReLU + Linear)
# ----------------------------------------------------------------------------
def _pred_kernel(x_ref, w1_ref, b1_ref, w2_ref, b2_ref, o_ref):
    y = jnp.dot(x_ref[...], w1_ref[...],
                preferred_element_type=jnp.float32) + b1_ref[...]
    y = jnp.maximum(y, 0.0)
    o_ref[...] = (jnp.dot(y, w2_ref[...], preferred_element_type=jnp.float32)
                  + b2_ref[...]).astype(o_ref.dtype)


def pred_head(graph_feats, p1, p2):
    g = graph_feats.shape[0]
    return pl.pallas_call(
        _pred_kernel,
        out_shape=jax.ShapeDtypeStruct((g, 1), jnp.float32),
        compiler_params=_CPARAMS_NOGRID,
    )(graph_feats, p1[0], p1[1], p2[0], p2[1])


# ----------------------------------------------------------------------------
# Set2Set readout (plain JAX glue — tiny: G graphs)
# TODO(synk): the custom Set2Set class definition was not provided; standard
# DGL Set2Set semantics (1-layer LSTM, n_iters=3) are used here.
# ----------------------------------------------------------------------------
def set2set(feat, membership, graph_id, lstm_params, n_iters=3):
    w_ih, w_hh, b_ih, b_hh = lstm_params          # (2D,4D),(D,4D),(4D,),(4D,)
    g_num = membership.shape[0]
    d = feat.shape[1]
    q_star = jnp.zeros((g_num, 2 * d), jnp.float32)
    h = jnp.zeros((g_num, d), jnp.float32)
    c = jnp.zeros((g_num, d), jnp.float32)
    for _ in range(n_iters):
        gates = q_star @ w_ih + b_ih + h @ w_hh + b_hh
        i = jax.nn.sigmoid(gates[:, :d])
        f = jax.nn.sigmoid(gates[:, d:2 * d])
        gg = jnp.tanh(gates[:, 2 * d:3 * d])
        o = jax.nn.sigmoid(gates[:, 3 * d:])
        c = f * c + i * gg
        h = o * jnp.tanh(c)
        q = h
        e = jnp.sum(feat * q[graph_id], axis=-1)                   # (V,)
        masked = jnp.where(membership > 0, e[None, :], -jnp.inf)   # (G, V)
        mx = jnp.max(masked, axis=1)                               # (G,)
        num = jnp.exp(e - mx[graph_id])
        den = membership @ num
        alpha = num / den[graph_id]
        readout = membership @ (feat * alpha[:, None])             # (G, D)
        q_star = jnp.concatenate([q, readout], axis=-1)
    return q_star


# ----------------------------------------------------------------------------
# parameter init (deterministic, PyTorch-style uniform bounds)
# ----------------------------------------------------------------------------
def init_linear(key, din, dout):
    kw, kb = jax.random.split(key)
    bound = 1.0 / (din ** 0.5)
    w = jax.random.uniform(kw, (din, dout), jnp.float32, -bound, bound)
    b = jax.random.uniform(kb, (1, dout), jnp.float32, -bound, bound)
    return w, b


def init_gru_stacked(key, hdim):
    """GRUCell params as a single (2H,4H) weight: rows [x|h], cols [r|z|i_n|h_n]."""
    k1, k2, k3, k4 = jax.random.split(key, 4)
    bound = 1.0 / (hdim ** 0.5)
    w_ih = jax.random.uniform(k1, (hdim, 3 * hdim), jnp.float32, -bound, bound)
    w_hh = jax.random.uniform(k2, (hdim, 3 * hdim), jnp.float32, -bound, bound)
    b_ih = jax.random.uniform(k3, (1, 3 * hdim), jnp.float32, -bound, bound)
    b_hh = jax.random.uniform(k4, (1, 3 * hdim), jnp.float32, -bound, bound)
    zero = jnp.zeros((hdim, hdim), jnp.float32)
    wgx = jnp.concatenate([w_ih[:, :hdim], w_ih[:, hdim:2 * hdim],
                           w_ih[:, 2 * hdim:], zero], axis=1)        # (H, 4H)
    wgh = jnp.concatenate([w_hh[:, :hdim], w_hh[:, hdim:2 * hdim],
                           zero, w_hh[:, 2 * hdim:]], axis=1)        # (H, 4H)
    wg = jnp.concatenate([wgx, wgh], axis=0)                         # (2H, 4H)
    bg = jnp.concatenate([b_ih[:, :hdim] + b_hh[:, :hdim],
                          b_ih[:, hdim:2 * hdim] + b_hh[:, hdim:2 * hdim],
                          b_ih[:, 2 * hdim:], b_hh[:, 2 * hdim:]], axis=1)
    return wg, bg


def init_layers_stacked(key, hdim, depth):
    layer_keys = jax.random.split(key, depth)
    w1s, b1s, w2s, b2s, wgs, bgs, gms, bts = ([] for _ in range(8))
    for d in range(depth):
        lk = jax.random.split(layer_keys[d], 3)
        w1, b1 = init_linear(lk[0], hdim, 2 * hdim)
        w2, b2 = init_linear(lk[1], 2 * hdim, hdim * hdim)
        wg, bg = init_gru_stacked(lk[2], hdim)
        w1s.append(w1); b1s.append(b1); w2s.append(w2); b2s.append(b2)
        wgs.append(wg); bgs.append(bg)
        gms.append(jnp.ones((1, hdim), jnp.float32))
        bts.append(jnp.zeros((1, hdim), jnp.float32))
    return {"w1": jnp.stack(w1s), "b1": jnp.stack(b1s),
            "w2": jnp.stack(w2s), "b2": jnp.stack(b2s),
            "wg": jnp.stack(wgs), "bg": jnp.stack(bgs),
            "gamma": jnp.stack(gms), "beta": jnp.stack(bts)}


def init_lstm(key, in_dim, hdim):
    k1, k2, k3, k4 = jax.random.split(key, 4)
    bound = 1.0 / (hdim ** 0.5)
    w_ih = jax.random.uniform(k1, (in_dim, 4 * hdim), jnp.float32, -bound, bound)
    w_hh = jax.random.uniform(k2, (hdim, 4 * hdim), jnp.float32, -bound, bound)
    b_ih = jax.random.uniform(k3, (4 * hdim,), jnp.float32, -bound, bound)
    b_hh = jax.random.uniform(k4, (4 * hdim,), jnp.float32, -bound, bound)
    return w_ih, w_hh, b_ih, b_hh


# ----------------------------------------------------------------------------
# full MPNNNet forward
# ----------------------------------------------------------------------------
def mpnn_forward(params, node_in, edge_in, src, dst, membership, graph_id,
                 depth, hidden_dim):
    v = node_in.shape[0]

    # dense graph operators used as MXU matmuls inside the fused layer kernel
    # TODO(synk): for non-toy graphs replace these O(E*V) one-hot matmuls with
    # scalar-prefetched gather/scatter (PrefetchScalarGridSpec) over edge tiles.
    src_onehot = (jnp.arange(v)[None, :] == src[:, None]).astype(jnp.bfloat16)  # (E, V)
    incidence = (jnp.arange(v)[:, None] == dst[None, :]).astype(jnp.bfloat16)   # (V, E)

    emb, layer_out = mpnn_layers_fused(node_in, edge_in, params, src_onehot,
                                       incidence, depth, hidden_dim)

    # hidden_out = cat([node_depth, ..., node_1, node_embed], dim=-1)
    slabs = [layer_out[d] for d in range(depth - 1, -1, -1)] + [emb]
    hidden_out = jnp.concatenate(slabs, axis=-1)

    graph_feats = set2set(hidden_out, membership, graph_id, params["set2set"])
    return pred_head(graph_feats, params["pred1"], params["pred2"])   # (G, 1)


# ----------------------------------------------------------------------------
# main
# ----------------------------------------------------------------------------
if __name__ == "__main__":
    NUM_ATOM_TYPE = 11
    NUM_BOND_TYPE = 5
    H = 32
    DEPTH = 2
    G = 2
    NODES_PER_GRAPH = 8
    V = G * NODES_PER_GRAPH

    key = jax.random.PRNGKey(0)
    ks = jax.random.split(key, 16)

    # ---- deterministic small graph: 2 graphs of 8 nodes, ring + skip edges
    src_list, dst_list, gid_list = [], [], []
    for g in range(G):
        base = g * NODES_PER_GRAPH
        for i in range(NODES_PER_GRAPH):
            src_list.append(base + i)
            dst_list.append(base + (i + 1) % NODES_PER_GRAPH)
            src_list.append(base + i)
            dst_list.append(base + (i + 3) % NODES_PER_GRAPH)
        gid_list += [g] * NODES_PER_GRAPH
    src = jnp.array(src_list, jnp.int32)
    dst = jnp.array(dst_list, jnp.int32)
    E = src.shape[0]
    graph_id = jnp.array(gid_list, jnp.int32)
    membership = (jnp.arange(G)[:, None] == graph_id[None, :]).astype(jnp.float32)

    # ---- inputs
    node_in = jax.random.normal(ks[0], (V, NUM_ATOM_TYPE), jnp.float32)
    edge_in = jax.random.normal(ks[1], (E, NUM_BOND_TYPE), jnp.float32)

    # ---- parameters (deterministic)
    params = {
        "emb_node": init_linear(ks[2], NUM_ATOM_TYPE, H),
        "emb_edge": init_linear(ks[3], NUM_BOND_TYPE, H),
        "linear_gate": init_linear(ks[4], 2 * H, H),
        "pred1": init_linear(ks[5], 2 * (DEPTH + 1) * H, H),
        "pred2": init_linear(ks[6], H, 1),
        "set2set": init_lstm(ks[7], 2 * (DEPTH + 1) * H, (DEPTH + 1) * H),
        "layers_stacked": init_layers_stacked(ks[8], H, DEPTH),
    }

    fwd = jax.jit(functools.partial(mpnn_forward, depth=DEPTH, hidden_dim=H))
    out = fwd(params, node_in, edge_in, src, dst, membership, graph_id)
    out = jax.block_until_ready(out)
    assert out.shape == (G, 1) and out.dtype == jnp.float32
    assert bool(jnp.all(jnp.isfinite(out)))
    print("KERNEL_OK")
</pallas_src>

<mosaic_0001>
module attributes {stable_mosaic.version = 11 : i64} {
  func.func @_mpnn_fused_kernel(%arg0: i32, %arg1: memref<16x11xf32, #tpu.memory_space<vmem>>, %arg2: memref<32x5xf32, #tpu.memory_space<vmem>>, %arg3: memref<11x32xf32, #tpu.memory_space<vmem>>, %arg4: memref<1x32xf32, #tpu.memory_space<vmem>>, %arg5: memref<5x32xf32, #tpu.memory_space<vmem>>, %arg6: memref<1x32xf32, #tpu.memory_space<vmem>>, %arg7: memref<32x16xbf16, #tpu.memory_space<vmem>>, %arg8: memref<16x32xbf16, #tpu.memory_space<vmem>>, %arg9: memref<32x1024xbf16, #tpu.memory_space<vmem>>, %arg10: memref<1024x32xbf16, #tpu.memory_space<vmem>>, %arg11: memref<64x32xbf16, #tpu.memory_space<vmem>>, %arg12: memref<1x32xf32, #tpu.memory_space<vmem>>, %arg13: memref<1x32x64xbf16, #tpu.memory_space<vmem>>, %arg14: memref<1x1x64xf32, #tpu.memory_space<vmem>>, %arg15: memref<1x64x1024xbf16, #tpu.memory_space<vmem>>, %arg16: memref<1x1x1024xf32, #tpu.memory_space<vmem>>, %arg17: memref<1x64x128xbf16, #tpu.memory_space<vmem>>, %arg18: memref<1x1x128xf32, #tpu.memory_space<vmem>>, %arg19: memref<1x1x32xf32, #tpu.memory_space<vmem>>, %arg20: memref<1x1x32xf32, #tpu.memory_space<vmem>>, %arg21: memref<16x32xf32, #tpu.memory_space<vmem>>, %arg22: memref<1x16x32xf32, #tpu.memory_space<vmem>>, %arg23: memref<16x32xf32, #tpu.memory_space<vmem>>, %arg24: memref<16x32xf32, #tpu.memory_space<vmem>>, %arg25: memref<32x32xf32, #tpu.memory_space<vmem>>) attributes {dimension_semantics = [#tpu.dimension_semantics<arbitrary>], iteration_bounds = array<i64: 2>, scalar_prefetch = 0 : i64, scratch_operands = 3 : i64, tpu.core_type = #tpu.core_type<tc>, window_params = [{pipeline_mode = #tpu.pipeline_mode<synchronous>, transform_indices = @transform_0, window_bounds = array<i64: 16, 11>}, {pipeline_mode = #tpu.pipeline_mode<synchronous>, transform_indices = @transform_1, window_bounds = array<i64: 32, 5>}, {pipeline_mode = #tpu.pipeline_mode<synchronous>, transform_indices = @transform_2, window_bounds = array<i64: 11, 32>}, {pipeline_mode = #tpu.pipeline_mode<synchronous>, transform_indices = @transform_3, window_bounds = array<i64: 1, 32>}, {pipeline_mode = #tpu.pipeline_mode<synchronous>, transform_indices = @transform_4, window_bounds = array<i64: 5, 32>}, {pipeline_mode = #tpu.pipeline_mode<synchronous>, transform_indices = @transform_5, window_bounds = array<i64: 1, 32>}, {pipeline_mode = #tpu.pipeline_mode<synchronous>, transform_indices = @transform_6, window_bounds = array<i64: 32, 16>}, {pipeline_mode = #tpu.pipeline_mode<synchronous>, transform_indices = @transform_7, window_bounds = array<i64: 16, 32>}, {pipeline_mode = #tpu.pipeline_mode<synchronous>, transform_indices = @transform_8, window_bounds = array<i64: 32, 1024>}, {pipeline_mode = #tpu.pipeline_mode<synchronous>, transform_indices = @transform_9, window_bounds = array<i64: 1024, 32>}, {pipeline_mode = #tpu.pipeline_mode<synchronous>, transform_indices = @transform_10, window_bounds = array<i64: 64, 32>}, {pipeline_mode = #tpu.pipeline_mode<synchronous>, transform_indices = @transform_11, window_bounds = array<i64: 1, 32>}, {transform_indices = @transform_12, window_bounds = array<i64: 1, 32, 64>}, {transform_indices = @transform_13, window_bounds = array<i64: 1, 1, 64>}, {transform_indices = @transform_14, window_bounds = array<i64: 1, 64, 1024>}, {transform_indices = @transform_15, window_bounds = array<i64: 1, 1, 1024>}, {transform_indices = @transform_16, window_bounds = array<i64: 1, 64, 128>}, {transform_indices = @transform_17, window_bounds = array<i64: 1, 1, 128>}, {transform_indices = @transform_18, window_bounds = array<i64: 1, 1, 32>}, {transform_indices = @transform_19, window_bounds = array<i64: 1, 1, 32>}, {pipeline_mode = #tpu.pipeline_mode<synchronous>, transform_indices = @transform_20, window_bounds = array<i64: 16, 32>}, {transform_indices = @transform_21, window_bounds = array<i64: 1, 16, 32>}]} {
    %c0_i32 = arith.constant 0 : i32
    %0 = arith.cmpi eq, %arg0, %c0_i32 : i32
    %1 = arith.extui %0 : i1 to i32
    %c0_i32_0 = arith.constant 0 : i32
    %2 = arith.cmpi ne, %1, %c0_i32_0 : i32
    scf.if %2 {
      %c0_66 = arith.constant 0 : index
      %c0_67 = arith.constant 0 : index
      %117 = vector.load %arg1[%c0_66, %c0_67] : memref<16x11xf32, #tpu.memory_space<vmem>>, vector<16x11xf32>
      %c0_68 = arith.constant 0 : index
      %c0_69 = arith.constant 0 : index
      %118 = vector.load %arg3[%c0_68, %c0_69] : memref<11x32xf32, #tpu.memory_space<vmem>>, vector<11x32xf32>
      %cst_70 = arith.constant dense<0.000000e+00> : vector<16x32xf32>
      %119 = tpu.matmul %117, %118, %cst_70 {dimension_numbers = #tpu.dot_dimension_numbers<[1], [0], [0], [1], [0, 0, 1, 1], [], []>} : vector<16x11xf32>, vector<11x32xf32>, vector<16x32xf32> -> vector<16x32xf32>
      %c0_71 = arith.constant 0 : index
      %c0_72 = arith.constant 0 : index
      %120 = vector.load %arg4[%c0_71, %c0_72] : memref<1x32xf32, #tpu.memory_space<vmem>>, vector<1x32xf32>
      %121 = vector.broadcast %120 : vector<1x32xf32> to vector<16x32xf32>
      %122 = arith.addf %119, %121 : vector<16x32xf32>
      %cst_73 = arith.constant 0.000000e+00 : f32
      %123 = vector.broadcast %cst_73 : f32 to vector<16x32xf32>
      %124 = arith.cmpf ogt, %122, %123 : vector<16x32xf32>
      %cst_74 = arith.constant 0.00999999977 : f32
      %125 = vector.broadcast %cst_74 : f32 to vector<16x32xf32>
      %126 = arith.mulf %125, %122 : vector<16x32xf32>
      %127 = arith.select %124, %122, %126 : vector<16x32xi1>, vector<16x32xf32>
      %c0_75 = arith.constant 0 : index
      %c0_76 = arith.constant 0 : index
      %128 = vector.load %arg2[%c0_75, %c0_76] : memref<32x5xf32, #tpu.memory_space<vmem>>, vector<32x5xf32>
      %c0_77 = arith.constant 0 : index
      %c0_78 = arith.constant 0 : index
      %129 = vector.load %arg5[%c0_77, %c0_78] : memref<5x32xf32, #tpu.memory_space<vmem>>, vector<5x32xf32>
      %cst_79 = arith.constant dense<0.000000e+00> : vector<32x32xf32>
      %130 = tpu.matmul %128, %129, %cst_79 {dimension_numbers = #tpu.dot_dimension_numbers<[1], [0], [0], [1], [0, 0, 1, 1], [], []>} : vector<32x5xf32>, vector<5x32xf32>, vector<32x32xf32> -> vector<32x32xf32>
      %c0_80 = arith.constant 0 : index
      %c0_81 = arith.constant 0 : index
      %131 = vector.load %arg6[%c0_80, %c0_81] : memref<1x32xf32, #tpu.memory_space<vmem>>, vector<1x32xf32>
      %132 = vector.broadcast %131 : vector<1x32xf32> to vector<32x32xf32>
      %133 = arith.addf %130, %132 : vector<32x32xf32>
      %cst_82 = arith.constant 0.000000e+00 : f32
      %134 = vector.broadcast %cst_82 : f32 to vector<32x32xf32>
      %135 = arith.cmpf ogt, %133, %134 : vector<32x32xf32>
      %cst_83 = arith.constant 0.00999999977 : f32
      %136 = vector.broadcast %cst_83 : f32 to vector<32x32xf32>
      %137 = arith.mulf %136, %133 : vector<32x32xf32>
      %138 = arith.select %135, %133, %137 : vector<32x32xi1>, vector<32x32xf32>
      %c0_84 = arith.constant 0 : index
      %c0_85 = arith.constant 0 : index
      %139 = vector.load %arg23[%c0_84, %c0_85] : memref<16x32xf32, #tpu.memory_space<vmem>>, vector<16x32xf32>
      tpu.vector_store %arg23[%c0_84, %c0_85], %127 {strides = array<i32>} : memref<16x32xf32, #tpu.memory_space<vmem>>, vector<16x32xf32>,
      %c0_86 = arith.constant 0 : index
      %c0_87 = arith.constant 0 : index
      %140 = vector.load %arg24[%c0_86, %c0_87] : memref<16x32xf32, #tpu.memory_space<vmem>>, vector<16x32xf32>
      tpu.vector_store %arg24[%c0_86, %c0_87], %127 {strides = array<i32>} : memref<16x32xf32, #tpu.memory_space<vmem>>, vector<16x32xf32>,
      %c0_88 = arith.constant 0 : index
      %c0_89 = arith.constant 0 : index
      %141 = vector.load %arg25[%c0_88, %c0_89] : memref<32x32xf32, #tpu.memory_space<vmem>>, vector<32x32xf32>
      tpu.vector_store %arg25[%c0_88, %c0_89], %138 {strides = array<i32>} : memref<32x32xf32, #tpu.memory_space<vmem>>, vector<32x32xf32>,
      %c0_90 = arith.constant 0 : index
      %c0_91 = arith.constant 0 : index
      %142 = vector.load %arg21[%c0_90, %c0_91] : memref<16x32xf32, #tpu.memory_space<vmem>>, vector<16x32xf32>
      tpu.vector_store %arg21[%c0_90, %c0_91], %127 {strides = array<i32>} : memref<16x32xf32, #tpu.memory_space<vmem>>, vector<16x32xf32>,
    } else {
    }
    %c0 = arith.constant 0 : index
    %c0_1 = arith.constant 0 : index
    %3 = vector.load %arg23[%c0, %c0_1] : memref<16x32xf32, #tpu.memory_space<vmem>>, vector<16x32xf32>
    %c0_2 = arith.constant 0 : index
    %c0_3 = arith.constant 0 : index
    %4 = vector.load %arg24[%c0_2, %c0_3] : memref<16x32xf32, #tpu.memory_space<vmem>>, vector<16x32xf32>
    %c0_4 = arith.constant 0 : index
    %c0_5 = arith.constant 0 : index
    %5 = vector.load %arg25[%c0_4, %c0_5] : memref<32x32xf32, #tpu.memory_space<vmem>>, vector<32x32xf32>
    %c0_6 = arith.constant 0 : index
    %c0_7 = arith.constant 0 : index
    %c0_8 = arith.constant 0 : index
    %6 = vector.load %arg13[%c0_6, %c0_7, %c0_8] : memref<1x32x64xbf16, #tpu.memory_space<vmem>>, vector<1x32x64xbf16>
    %7 = vector.shape_cast %6 : vector<1x32x64xbf16> to vector<32x64xbf16>
    %c0_9 = arith.constant 0 : index
    %c0_10 = arith.constant 0 : index
    %c0_11 = arith.constant 0 : index
    %8 = vector.load %arg14[%c0_9, %c0_10, %c0_11] : memref<1x1x64xf32, #tpu.memory_space<vmem>>, vector<1x1x64xf32>
    %9 = vector.shape_cast %8 : vector<1x1x64xf32> to vector<1x64xf32>
    %c0_12 = arith.constant 0 : index
    %c0_13 = arith.constant 0 : index
    %c0_14 = arith.constant 0 : index
    %10 = vector.load %arg15[%c0_12, %c0_13, %c0_14] : memref<1x64x1024xbf16, #tpu.memory_space<vmem>>, vector<1x64x1024xbf16>
    %11 = vector.shape_cast %10 : vector<1x64x1024xbf16> to vector<64x1024xbf16>
    %c0_15 = arith.constant 0 : index
    %c0_16 = arith.constant 0 : index
    %c0_17 = arith.constant 0 : index
    %12 = vector.load %arg16[%c0_15, %c0_16, %c0_17] : memref<1x1x1024xf32, #tpu.memory_space<vmem>>, vector<1x1x1024xf32>
    %13 = vector.shape_cast %12 : vector<1x1x1024xf32> to vector<1x1024xf32>
    %c0_18 = arith.constant 0 : index
    %c0_19 = arith.constant 0 : index
    %c0_20 = arith.constant 0 : index
    %14 = vector.load %arg17[%c0_18, %c0_19, %c0_20] : memref<1x64x128xbf16, #tpu.memory_space<vmem>>, vector<1x64x128xbf16>
    %15 = vector.shape_cast %14 : vector<1x64x128xbf16> to vector<64x128xbf16>
    %c0_21 = arith.constant 0 : index
    %c0_22 = arith.constant 0 : index
    %c0_23 = arith.constant 0 : index
    %16 = vector.load %arg18[%c0_21, %c0_22, %c0_23] : memref<1x1x128xf32, #tpu.memory_space<vmem>>, vector<1x1x128xf32>
    %17 = vector.shape_cast %16 : vector<1x1x128xf32> to vector<1x128xf32>
    %c0_24 = arith.constant 0 : index
    %c0_25 = arith.constant 0 : index
    %c0_26 = arith.constant 0 : index
    %18 = vector.load %arg19[%c0_24, %c0_25, %c0_26] : memref<1x1x32xf32, #tpu.memory_space<vmem>>, vector<1x1x32xf32>
    %19 = vector.shape_cast %18 : vector<1x1x32xf32> to vector<1x32xf32>
    %c0_27 = arith.constant 0 : index
    %c0_28 = arith.constant 0 : index
    %c0_29 = arith.constant 0 : index
    %20 = vector.load %arg20[%c0_27, %c0_28, %c0_29] : memref<1x1x32xf32, #tpu.memory_space<vmem>>, vector<1x1x32xf32>
    %21 = vector.shape_cast %20 : vector<1x1x32xf32> to vector<1x32xf32>
    %22 = arith.truncf %5 : vector<32x32xf32> to vector<32x32xbf16>
    %cst = arith.constant dense<0.000000e+00> : vector<32x64xf32>
    %23 = tpu.matmul %22, %7, %cst {dimension_numbers = #tpu.dot_dimension_numbers<[1], [0], [0], [1], [0, 0, 1, 1], [], []>} : vector<32x32xbf16>, vector<32x64xbf16>, vector<32x64xf32> -> vector<32x64xf32>
    %24 = vector.broadcast %9 : vector<1x64xf32> to vector<32x64xf32>
    %25 = arith.addf %23, %24 : vector<32x64xf32>
    %cst_30 = arith.constant 0.000000e+00 : f32
    %26 = vector.broadcast %cst_30 : f32 to vector<32x64xf32>
    %27 = arith.maximumf %25, %26 : vector<32x64xf32>
    %28 = arith.truncf %27 : vector<32x64xf32> to vector<32x64xbf16>
    %cst_31 = arith.constant dense<0.000000e+00> : vector<32x1024xf32>
    %29 = tpu.matmul %28, %11, %cst_31 {dimension_numbers = #tpu.dot_dimension_numbers<[1], [0], [0], [1], [0, 0, 1, 1], [], []>} : vector<32x64xbf16>, vector<64x1024xbf16>, vector<32x1024xf32> -> vector<32x1024xf32>
    %30 = vector.broadcast %13 : vector<1x1024xf32> to vector<32x1024xf32>
    %31 = arith.addf %29, %30 : vector<32x1024xf32>
    %c0_32 = arith.constant 0 : index
    %c0_33 = arith.constant 0 : index
    %32 = vector.load %arg7[%c0_32, %c0_33] : memref<32x16xbf16, #tpu.memory_space<vmem>>, vector<32x16xbf16>
    %33 = arith.truncf %3 : vector<16x32xf32> to vector<16x32xbf16>
    %cst_34 = arith.constant dense<0.000000e+00> : vector<32x32xf32>
    %34 = tpu.matmul %32, %33, %cst_34 {dimension_numbers = #tpu.dot_dimension_numbers<[1], [0], [0], [1], [0, 0, 1, 1], [], []>} : vector<32x16xbf16>, vector<16x32xbf16>, vector<32x32xf32> -> vector<32x32xf32>
    %35 = arith.truncf %34 : vector<32x32xf32> to vector<32x32xbf16>
    %c0_35 = arith.constant 0 : index
    %c0_36 = arith.constant 0 : index
    %36 = vector.load %arg9[%c0_35, %c0_36] : memref<32x1024xbf16, #tpu.memory_space<vmem>>, vector<32x1024xbf16>
    %cst_37 = arith.constant dense<0.000000e+00> : vector<32x1024xf32>
    %37 = tpu.matmul %35, %36, %cst_37 {dimension_numbers = #tpu.dot_dimension_numbers<[1], [0], [0], [1], [0, 0, 1, 1], [], []>} : vector<32x32xbf16>, vector<32x1024xbf16>, vector<32x1024xf32> -> vector<32x1024xf32>
    %38 = arith.mulf %37, %31 : vector<32x1024xf32>
    %39 = arith.truncf %38 : vector<32x1024xf32> to vector<32x1024xbf16>
    %c0_38 = arith.constant 0 : index
    %c0_39 = arith.constant 0 : index
    %40 = vector.load %arg10[%c0_38, %c0_39] : memref<1024x32xbf16, #tpu.memory_space<vmem>>, vector<1024x32xbf16>
    %cst_40 = arith.constant dense<0.000000e+00> : vector<32x32xf32>
    %41 = tpu.matmul %39, %40, %cst_40 {dimension_numbers = #tpu.dot_dimension_numbers<[1], [0], [0], [1], [0, 0, 1, 1], [], []>} : vector<32x1024xbf16>, vector<1024x32xbf16>, vector<32x32xf32> -> vector<32x32xf32>
    %c0_41 = arith.constant 0 : index
    %c0_42 = arith.constant 0 : index
    %42 = vector.load %arg8[%c0_41, %c0_42] : memref<16x32xbf16, #tpu.memory_space<vmem>>, vector<16x32xbf16>
    %43 = arith.truncf %41 : vector<32x32xf32> to vector<32x32xbf16>
    %cst_43 = arith.constant dense<0.000000e+00> : vector<16x32xf32>
    %44 = tpu.matmul %42, %43, %cst_43 {dimension_numbers = #tpu.dot_dimension_numbers<[1], [0], [0], [1], [0, 0, 1, 1], [], []>} : vector<16x32xbf16>, vector<32x32xbf16>, vector<16x32xf32> -> vector<16x32xf32>
    %cst_44 = arith.constant 0.000000e+00 : f32
    %45 = vector.broadcast %cst_44 : f32 to vector<16x32xf32>
    %46 = arith.maximumf %44, %45 : vector<16x32xf32>
    %47 = tpu.concatenate %46, %4 in 1 : vector<16x32xf32>, vector<16x32xf32> -> vector<16x64xf32>
    %48 = arith.truncf %47 : vector<16x64xf32> to vector<16x64xbf16>
    %cst_45 = arith.constant dense<0.000000e+00> : vector<16x128xf32>
    %49 = tpu.matmul %48, %15, %cst_45 {dimension_numbers = #tpu.dot_dimension_numbers<[1], [0], [0], [1], [0, 0, 1, 1], [], []>} : vector<16x64xbf16>, vector<64x128xbf16>, vector<16x128xf32> -> vector<16x128xf32>
    %50 = vector.broadcast %17 : vector<1x128xf32> to vector<16x128xf32>
    %51 = arith.addf %49, %50 : vector<16x128xf32>
    %52 = vector.extract_strided_slice %51 {offsets = [0, 0], sizes = [16, 32], strides = [1, 1]} : vector<16x128xf32> to vector<16x32xf32>
    %53 = arith.negf %52 : vector<16x32xf32>
    %54 = math.exp %53 : vector<16x32xf32>
    %cst_46 = arith.constant 1.000000e+00 : f32
    %55 = vector.broadcast %cst_46 : f32 to vector<16x32xf32>
    %56 = arith.addf %55, %54 : vector<16x32xf32>
    %57 = arith.divf %55, %56 : vector<16x32xf32>
    %58 = vector.extract_strided_slice %51 {offsets = [0, 32], sizes = [16, 32], strides = [1, 1]} : vector<16x128xf32> to vector<16x32xf32>
    %59 = arith.negf %58 : vector<16x32xf32>
    %60 = math.exp %59 : vector<16x32xf32>
    %cst_47 = arith.constant 1.000000e+00 : f32
    %61 = vector.broadcast %cst_47 : f32 to vector<16x32xf32>
    %62 = arith.addf %61, %60 : vector<16x32xf32>
    %63 = arith.divf %61, %62 : vector<16x32xf32>
    %64 = vector.extract_strided_slice %51 {offsets = [0, 64], sizes = [16, 32], strides = [1, 1]} : vector<16x128xf32> to vector<16x32xf32>
    %65 = vector.extract_strided_slice %51 {offsets = [0, 96], sizes = [16, 32], strides = [1, 1]} : vector<16x128xf32> to vector<16x32xf32>
    %66 = arith.mulf %57, %65 : vector<16x32xf32>
    %67 = arith.addf %64, %66 : vector<16x32xf32>
    %68 = math.tanh %67 : vector<16x32xf32>
    %cst_48 = arith.constant 1.000000e+00 : f32
    %69 = vector.broadcast %cst_48 : f32 to vector<16x32xf32>
    %70 = arith.subf %69, %63 : vector<16x32xf32>
    %71 = arith.mulf %70, %68 : vector<16x32xf32>
    %72 = arith.mulf %63, %4 : vector<16x32xf32>
    %73 = arith.addf %71, %72 : vector<16x32xf32>
    %cst_49 = arith.constant dense<0.000000e+00> : vector<16xf32>
    %74 = vector.multi_reduction <add>, %73, %cst_49 [1] : vector<16x32xf32> to vector<16xf32>
    %75 = vector.shape_cast %74 : vector<16xf32> to vector<16x1xf32>
    %cst_50 = arith.constant 3.200000e+01 : f32
    %76 = vector.broadcast %cst_50 : f32 to vector<16x1xf32>
    %77 = arith.divf %75, %76 : vector<16x1xf32>
    %78 = vector.broadcast %77 : vector<16x1xf32> to vector<16x32xf32>
    %79 = arith.subf %73, %78 : vector<16x32xf32>
    %80 = arith.mulf %79, %79 : vector<16x32xf32>
    %cst_51 = arith.constant dense<0.000000e+00> : vector<16xf32>
    %81 = vector.multi_reduction <add>, %80, %cst_51 [1] : vector<16x32xf32> to vector<16xf32>
    %82 = vector.shape_cast %81 : vector<16xf32> to vector<16x1xf32>
    %cst_52 = arith.constant 3.200000e+01 : f32
    %83 = vector.broadcast %cst_52 : f32 to vector<16x1xf32>
    %84 = arith.divf %82, %83 : vector<16x1xf32>
    %85 = vector.broadcast %77 : vector<16x1xf32> to vector<16x32xf32>
    %86 = arith.subf %73, %85 : vector<16x32xf32>
    %cst_53 = arith.constant 9.99999974E-6 : f32
    %87 = vector.broadcast %cst_53 : f32 to vector<16x1xf32>
    %88 = arith.addf %84, %87 : vector<16x1xf32>
    %89 = math.rsqrt %88 : vector<16x1xf32>
    %90 = vector.broadcast %89 : vector<16x1xf32> to vector<16x32xf32>
    %91 = arith.mulf %86, %90 : vector<16x32xf32>
    %92 = vector.broadcast %19 : vector<1x32xf32> to vector<16x32xf32>
    %93 = arith.mulf %91, %92 : vector<16x32xf32>
    %94 = vector.broadcast %21 : vector<1x32xf32> to vector<16x32xf32>
    %95 = arith.addf %93, %94 : vector<16x32xf32>
    %96 = tpu.concatenate %95, %4 in 1 : vector<16x32xf32>, vector<16x32xf32> -> vector<16x64xf32>
    %97 = arith.truncf %96 : vector<16x64xf32> to vector<16x64xbf16>
    %c0_54 = arith.constant 0 : index
    %c0_55 = arith.constant 0 : index
    %98 = vector.load %arg11[%c0_54, %c0_55] : memref<64x32xbf16, #tpu.memory_space<vmem>>, vector<64x32xbf16>
    %cst_56 = arith.constant dense<0.000000e+00> : vector<16x32xf32>
    %99 = tpu.matmul %97, %98, %cst_56 {dimension_numbers = #tpu.dot_dimension_numbers<[1], [0], [0], [1], [0, 0, 1, 1], [], []>} : vector<16x64xbf16>, vector<64x32xbf16>, vector<16x32xf32> -> vector<16x32xf32>
    %c0_57 = arith.constant 0 : index
    %c0_58 = arith.constant 0 : index
    %100 = vector.load %arg12[%c0_57, %c0_58] : memref<1x32xf32, #tpu.memory_space<vmem>>, vector<1x32xf32>
    %101 = vector.broadcast %100 : vector<1x32xf32> to vector<16x32xf32>
    %102 = arith.addf %99, %101 : vector<16x32xf32>
    %103 = arith.negf %102 : vector<16x32xf32>
    %104 = math.exp %103 : vector<16x32xf32>
    %cst_59 = arith.constant 1.000000e+00 : f32
    %105 = vector.broadcast %cst_59 : f32 to vector<16x32xf32>
    %106 = arith.addf %105, %104 : vector<16x32xf32>
    %107 = arith.divf %105, %106 : vector<16x32xf32>
    %108 = arith.mulf %107, %95 : vector<16x32xf32>
    %cst_60 = arith.constant 1.000000e+00 : f32
    %109 = vector.broadcast %cst_60 : f32 to vector<16x32xf32>
    %110 = arith.subf %109, %107 : vector<16x32xf32>
    %111 = arith.mulf %110, %4 : vector<16x32xf32>
    %112 = arith.addf %108, %111 : vector<16x32xf32>
    %c0_61 = arith.constant 0 : index
    %c0_62 = arith.constant 0 : index
    %113 = vector.load %arg23[%c0_61, %c0_62] : memref<16x32xf32, #tpu.memory_space<vmem>>, vector<16x32xf32>
    tpu.vector_store %arg23[%c0_61, %c0_62], %112 {strides = array<i32>} : memref<16x32xf32, #tpu.memory_space<vmem>>, vector<16x32xf32>,
    %c0_63 = arith.constant 0 : index
    %c0_64 = arith.constant 0 : index
    %c0_65 = arith.constant 0 : index
    %114 = vector.load %arg22[%c0_63, %c0_64, %c0_65] : memref<1x16x32xf32, #tpu.memory_space<vmem>>, vector<1x16x32xf32>
    %115 = vector.shape_cast %114 : vector<1x16x32xf32> to vector<16x32xf32>
    %116 = vector.shape_cast %112 : vector<16x32xf32> to vector<1x16x32xf32>
    tpu.vector_store %arg22[%c0_63, %c0_64, %c0_65], %116 {strides = array<i32>} : memref<1x16x32xf32, #tpu.memory_space<vmem>>, vector<1x16x32xf32>,
    return
  }
  func.func @transform_0(%arg0: i32) -> (i32, i32) {
    %c0_i32 = arith.constant 0 : i32
    %c0_i32_0 = arith.constant 0 : i32
    %c0_i32_1 = arith.constant 0 : i32
    return %c0_i32, %c0_i32_0 : i32, i32
  }
  func.func @transform_1(%arg0: i32) -> (i32, i32) {
    %c0_i32 = arith.constant 0 : i32
    %c0_i32_0 = arith.constant 0 : i32
    %c0_i32_1 = arith.constant 0 : i32
    return %c0_i32, %c0_i32_0 : i32, i32
  }
  func.func @transform_2(%arg0: i32) -> (i32, i32) {
    %c0_i32 = arith.constant 0 : i32
    %c0_i32_0 = arith.constant 0 : i32
    %c0_i32_1 = arith.constant 0 : i32
    return %c0_i32, %c0_i32_0 : i32, i32
  }
  func.func @transform_3(%arg0: i32) -> (i32, i32) {
    %c0_i32 = arith.constant 0 : i32
    %c0_i32_0 = arith.constant 0 : i32
    %c0_i32_1 = arith.constant 0 : i32
    return %c0_i32, %c0_i32_0 : i32, i32
  }
  func.func @transform_4(%arg0: i32) -> (i32, i32) {
    %c0_i32 = arith.constant 0 : i32
    %c0_i32_0 = arith.constant 0 : i32
    %c0_i32_1 = arith.constant 0 : i32
    return %c0_i32, %c0_i32_0 : i32, i32
  }
  func.func @transform_5(%arg0: i32) -> (i32, i32) {
    %c0_i32 = arith.constant 0 : i32
    %c0_i32_0 = arith.constant 0 : i32
    %c0_i32_1 = arith.constant 0 : i32
    return %c0_i32, %c0_i32_0 : i32, i32
  }
  func.func @transform_6(%arg0: i32) -> (i32, i32) {
    %c0_i32 = arith.constant 0 : i32
    %c0_i32_0 = arith.constant 0 : i32
    %c0_i32_1 = arith.constant 0 : i32
    return %c0_i32, %c0_i32_0 : i32, i32
  }
  func.func @transform_7(%arg0: i32) -> (i32, i32) {
    %c0_i32 = arith.constant 0 : i32
    %c0_i32_0 = arith.constant 0 : i32
    %c0_i32_1 = arith.constant 0 : i32
    return %c0_i32, %c0_i32_0 : i32, i32
  }
  func.func @transform_8(%arg0: i32) -> (i32, i32) {
    %c0_i32 = arith.constant 0 : i32
    %c0_i32_0 = arith.constant 0 : i32
    %c0_i32_1 = arith.constant 0 : i32
    return %c0_i32, %c0_i32_0 : i32, i32
  }
  func.func @transform_9(%arg0: i32) -> (i32, i32) {
    %c0_i32 = arith.constant 0 : i32
    %c0_i32_0 = arith.constant 0 : i32
    %c0_i32_1 = arith.constant 0 : i32
    return %c0_i32, %c0_i32_0 : i32, i32
  }
  func.func @transform_10(%arg0: i32) -> (i32, i32) {
    %c0_i32 = arith.constant 0 : i32
    %c0_i32_0 = arith.constant 0 : i32
    %c0_i32_1 = arith.constant 0 : i32
    return %c0_i32, %c0_i32_0 : i32, i32
  }
  func.func @transform_11(%arg0: i32) -> (i32, i32) {
    %c0_i32 = arith.constant 0 : i32
    %c0_i32_0 = arith.constant 0 : i32
    %c0_i32_1 = arith.constant 0 : i32
    return %c0_i32, %c0_i32_0 : i32, i32
  }
  func.func @transform_12(%arg0: i32) -> (i32, i32, i32) {
    %c0_i32 = arith.constant 0 : i32
    %c0_i32_0 = arith.constant 0 : i32
    %c0_i32_1 = arith.constant 0 : i32
    return %arg0, %c0_i32, %c0_i32_0 : i32, i32, i32
  }
  func.func @transform_13(%arg0: i32) -> (i32, i32, i32) {
    %c0_i32 = arith.constant 0 : i32
    %c0_i32_0 = arith.constant 0 : i32
    %c0_i32_1 = arith.constant 0 : i32
    return %arg0, %c0_i32, %c0_i32_0 : i32, i32, i32
  }
  func.func @transform_14(%arg0: i32) -> (i32, i32, i32) {
    %c0_i32 = arith.constant 0 : i32
    %c0_i32_0 = arith.constant 0 : i32
    %c0_i32_1 = arith.constant 0 : i32
    return %arg0, %c0_i32, %c0_i32_0 : i32, i32, i32
  }
  func.func @transform_15(%arg0: i32) -> (i32, i32, i32) {
    %c0_i32 = arith.constant 0 : i32
    %c0_i32_0 = arith.constant 0 : i32
    %c0_i32_1 = arith.constant 0 : i32
    return %arg0, %c0_i32, %c0_i32_0 : i32, i32, i32
  }
  func.func @transform_16(%arg0: i32) -> (i32, i32, i32) {
    %c0_i32 = arith.constant 0 : i32
    %c0_i32_0 = arith.constant 0 : i32
    %c0_i32_1 = arith.constant 0 : i32
    return %arg0, %c0_i32, %c0_i32_0 : i32, i32, i32
  }
  func.func @transform_17(%arg0: i32) -> (i32, i32, i32) {
    %c0_i32 = arith.constant 0 : i32
    %c0_i32_0 = arith.constant 0 : i32
    %c0_i32_1 = arith.constant 0 : i32
    return %arg0, %c0_i32, %c0_i32_0 : i32, i32, i32
  }
  func.func @transform_18(%arg0: i32) -> (i32, i32, i32) {
    %c0_i32 = arith.constant 0 : i32
    %c0_i32_0 = arith.constant 0 : i32
    %c0_i32_1 = arith.constant 0 : i32
    return %arg0, %c0_i32, %c0_i32_0 : i32, i32, i32
  }
  func.func @transform_19(%arg0: i32) -> (i32, i32, i32) {
    %c0_i32 = arith.constant 0 : i32
    %c0_i32_0 = arith.constant 0 : i32
    %c0_i32_1 = arith.constant 0 : i32
    return %arg0, %c0_i32, %c0_i32_0 : i32, i32, i32
  }
  func.func @transform_20(%arg0: i32) -> (i32, i32) {
    %c0_i32 = arith.constant 0 : i32
    %c0_i32_0 = arith.constant 0 : i32
    %c0_i32_1 = arith.constant 0 : i32
    return %c0_i32, %c0_i32_0 : i32, i32
  }
  func.func @transform_21(%arg0: i32) -> (i32, i32, i32) {
    %c0_i32 = arith.constant 0 : i32
    %c0_i32_0 = arith.constant 0 : i32
    %c0_i32_1 = arith.constant 0 : i32
    return %arg0, %c0_i32, %c0_i32_0 : i32, i32, i32
  }
}

module attributes {stable_mosaic.version = 11 : i64} {
  func.func @_pred_kernel(%arg0: memref<2x192xf32, #tpu.memory_space<vmem>>, %arg1: memref<192x32xf32, #tpu.memory_space<vmem>>, %arg2: memref<1x32xf32, #tpu.memory_space<vmem>>, %arg3: memref<32x1xf32, #tpu.memory_space<vmem>>, %arg4: memref<1x1xf32, #tpu.memory_space<vmem>>, %arg5: memref<2x1xf32, #tpu.memory_space<vmem>>) attributes {dimension_semantics = [], scalar_prefetch = 0 : i64, scratch_operands = 0 : i64, tpu.core_type = #tpu.core_type<tc>} {
    %c0 = arith.constant 0 : index
    %c0_0 = arith.constant 0 : index
    %0 = vector.load %arg0[%c0, %c0_0] : memref<2x192xf32, #tpu.memory_space<vmem>>, vector<2x192xf32>
    %c0_1 = arith.constant 0 : index
    %c0_2 = arith.constant 0 : index
    %1 = vector.load %arg1[%c0_1, %c0_2] : memref<192x32xf32, #tpu.memory_space<vmem>>, vector<192x32xf32>
    %cst = arith.constant dense<0.000000e+00> : vector<2x32xf32>
    %2 = tpu.matmul %0, %1, %cst {dimension_numbers = #tpu.dot_dimension_numbers<[1], [0], [0], [1], [0, 0, 1, 1], [], []>} : vector<2x192xf32>, vector<192x32xf32>, vector<2x32xf32> -> vector<2x32xf32>
    %c0_3 = arith.constant 0 : index
    %c0_4 = arith.constant 0 : index
    %3 = vector.load %arg2[%c0_3, %c0_4] : memref<1x32xf32, #tpu.memory_space<vmem>>, vector<1x32xf32>
    %4 = vector.broadcast %3 : vector<1x32xf32> to vector<2x32xf32>
    %5 = arith.addf %2, %4 : vector<2x32xf32>
    %cst_5 = arith.constant 0.000000e+00 : f32
    %6 = vector.broadcast %cst_5 : f32 to vector<2x32xf32>
    %7 = arith.maximumf %5, %6 : vector<2x32xf32>
    %c0_6 = arith.constant 0 : index
    %c0_7 = arith.constant 0 : index
    %8 = vector.load %arg3[%c0_6, %c0_7] : memref<32x1xf32, #tpu.memory_space<vmem>>, vector<32x1xf32>
    %cst_8 = arith.constant dense<0.000000e+00> : vector<2x1xf32>
    %9 = tpu.matmul %7, %8, %cst_8 {dimension_numbers = #tpu.dot_dimension_numbers<[1], [0], [0], [1], [0, 0, 1, 1], [], []>} : vector<2x32xf32>, vector<32x1xf32>, vector<2x1xf32> -> vector<2x1xf32>
    %c0_9 = arith.constant 0 : index
    %c0_10 = arith.constant 0 : index
    %10 = vector.load %arg4[%c0_9, %c0_10] : memref<1x1xf32, #tpu.memory_space<vmem>>, vector<1x1xf32>
    %11 = vector.broadcast %10 : vector<1x1xf32> to vector<2x1xf32>
    %12 = arith.addf %9, %11 : vector<2x1xf32>
    %c0_11 = arith.constant 0 : index
    %c0_12 = arith.constant 0 : index
    %13 = vector.load %arg5[%c0_11, %c0_12] : memref<2x1xf32, #tpu.memory_space<vmem>>, vector<2x1xf32>
    tpu.vector_store %arg5[%c0_11, %c0_12], %12 {strides = array<i32>} : memref<2x1xf32, #tpu.memory_space<vmem>>, vector<2x1xf32>,
    return
  }
}

</mosaic_0001>

<bundles_post_ra>
// kernel: mpnn_forward.3
= control target key start
LH: loop header
LB: loop body
LE: loop exit
PB: predicated region body
PF: predicated region fallthrough
CT: control target
= control target key end

     0   :  { %v295_v0 = vmov 0.0|0.0   ;;  %vm64_vm0 = vcmask 523264   ;;  %vm296_vm1 = vmmov 0   ;;  %v297_v45 = vmov 0.0   ;;  %s438_s1 = inlined_call_operand.vmem [shape: f32[192,32], index: 1, kind: input, shape index: {}]   ;;  %s439_s0 = inlined_call_operand.vmem [shape: f32[2,192], index: 0, kind: input, shape index: {}]   ;;  %s440_s3 = inlined_call_operand.vmem [shape: f32[32,1], index: 3, kind: input, shape index: {}]   ;;  %s441_s4 = inlined_call_operand.<no memory space> [shape: f32[1,1], index: 4, kind: input, shape index: {}]   ;;  %s442_s2 = inlined_call_operand.vmem [shape: f32[1,32], index: 2, kind: input, shape index: {}]   ;;  %s443_s5 = inlined_call_operand.vmem [shape: f32[2,1], index: 5, kind: output, shape index: {}]  }
   0x1   :  { %250 = vmatprep.subr.bf16.mxu0 %v295_v0  ;;  %v23_v1 = vld [vmem:[%s438_s1] sm:$0xff]  ;;  %v24_v2 = vld [vmem:[%s438_s1 + $0x8] sm:$0xff]  ;;  %v25_v3 = vld [vmem:[%s438_s1 + $0x10] sm:$0xff]  ;;  %286 = vmatprep.subr.bf16.mxu1 %v295_v0  ;;  %v10_v46 = vstv %s441_s4  ;;  %vm149_vm2 = vcmask 261120   ;;  %vm223_vm3 = vcmask 1024  }
   0x2   :  { %v251_v4 = vpack.c.bf16 %v24_v2, %v23_v1  ;;  %v26_v5 = vld [vmem:[%s438_s1 + $0x18] sm:$0xff]  ;;  %v27_v7 = vld [vmem:[%s438_s1 + $0x20] sm:$0xff]  ;;  %v28_v8 = vld [vmem:[%s438_s1 + $0x28] sm:$0xff]  ;;  %247 = vmatprep.mubr.msk.f32.mxu1 %vm296_vm1, %v297_v45  ;;  %11 = vst [vmem:[#allocation2] sm:$0x1] %v10_v46 }
   0x3   :  { %v254_v6 = vpack.c.bf16 %v26_v5, %v25_v3  ;;  %v257_v9 = vpack.c.bf16 %v28_v8, %v27_v7  ;;  %v29_v10 = vld [vmem:[%s438_s1 + $0x30] sm:$0xff]  ;;  %v30_v11 = vld [vmem:[%s438_s1 + $0x38] sm:$0xff]  ;;  %v230_v12 = vld.sshfl [vmem:[%s439_s0] sm:$0x33 pattern:$0x76325410] }
   0x4   :  { %252 = vmatpush1.bf16.msra.mxu0 %v251_v4  ;;  %v138_v13 = vld [vmem:[%s440_s3] sm:$0xff]  ;;  %v139_v14 = vld [vmem:[%s440_s3 + $0x8] sm:$0xff]  ;;  %v62_v15 = vcombine.high %v230_v12, %v230_v12  ;;  %v260_v17 = vpack.c.bf16 %v30_v11, %v29_v10  ;;  %v33_v21 = vld [vmem:[%s438_s1 + $0x50] sm:$0xff] }
   0x5   :  { %253 = vmatprep.subr.bf16.mxu0 %v295_v0  ;;  %v287_v16 = vpack.c.bf16 %v139_v14, %v138_v13  ;;  %v31_v18 = vld [vmem:[%s438_s1 + $0x40] sm:$0xff]  ;;  %v32_v19 = vld [vmem:[%s438_s1 + $0x48] sm:$0xff]  ;;  %v34_v22 = vld [vmem:[%s438_s1 + $0x58] sm:$0xff] }
   0x6   :  { %231 = vmatprep.mubr.msk.f32.mxu0 %vm64_vm0, %v62_v15  ;;  %v263_v20 = vpack.c.bf16 %v32_v19, %v31_v18  ;;  %v266_v23 = vpack.c.bf16 %v34_v22, %v33_v21  ;;  %v35_v24 = vld [vmem:[%s438_s1 + $0x60] sm:$0xff]  ;;  %v36_v25 = vld [vmem:[%s438_s1 + $0x68] sm:$0xff]  ;;  %v37_v27 = vld [vmem:[%s438_s1 + $0x70] sm:$0xff] }
   0x7   :  { %288 = vmatpush3.bf16.msra.mxu1 %v287_v16  ;;  %v269_v26 = vpack.c.bf16 %v36_v25, %v35_v24  ;;  %v38_v28 = vld [vmem:[%s438_s1 + $0x78] sm:$0xff]  ;;  %v39_v30 = vld [vmem:[%s438_s1 + $0x80] sm:$0xff]  ;;  %v40_v31 = vld [vmem:[%s438_s1 + $0x88] sm:$0xff] }
   0x8   :  { %255 = vmatpush1.bf16.msra.mxu0 %v254_v6  ;;  %289 = vmatprep.subr.bf16.mxu1 %v295_v0  ;;  %v272_v29 = vpack.c.bf16 %v38_v28, %v37_v27  ;;  %v275_v32 = vpack.c.bf16 %v40_v31, %v39_v30  ;;  %v41_v33 = vld [vmem:[%s438_s1 + $0x90] sm:$0xff]  ;;  %v42_v34 = vld [vmem:[%s438_s1 + $0x98] sm:$0xff]  ;;  %v43_v36 = vld [vmem:[%s438_s1 + $0xa0] sm:$0xff] }
   0x9   :  { %256 = vmatprep.subr.bf16.mxu0 %v295_v0  ;;  %v278_v35 = vpack.c.bf16 %v42_v34, %v41_v33  ;;  %v44_v37 = vld [vmem:[%s438_s1 + $0xa8] sm:$0xff]  ;;  %v45_v39 = vld [vmem:[%s438_s1 + $0xb0] sm:$0xff]  ;;  %v46_v40 = vld [vmem:[%s438_s1 + $0xb8] sm:$0xff] }
   0xa   :  { %v281_v38 = vpack.c.bf16 %v44_v37, %v43_v36  ;;  %v284_v41 = vpack.c.bf16 %v46_v40, %v45_v39  ;;  %v140_v42 = vld [vmem:[%s440_s3 + $0x10] sm:$0xff]  ;;  %v141_v43 = vld [vmem:[%s440_s3 + $0x18] sm:$0xff]  ;;  %v229_v47 = vld [vmem:[%s442_s2] ss:$0 sm:$0xff] }
   0xb   :  { %v290_v44 = vpack.c.bf16 %v141_v43, %v140_v42  ;;  %v232_v52 = vld [vmem:[#allocation2] ss:$0 sm:$0xff] }
   0xc   :  { %258 = vmatpush1.bf16.msra.mxu0 %v257_v9 }
   0xd   :  { %259 = vmatprep.subr.bf16.mxu0 %v295_v0  ;;  %291 = vmatpush3.bf16.msra.mxu1 %v290_v44 }
  0x10   :  { %261 = vmatpush1.bf16.msra.mxu0 %v260_v17 }
  0x11   :  { %262 = vmatprep.subr.bf16.mxu0 %v295_v0 }
  0x14   :  { %264 = vmatpush1.bf16.msra.mxu0 %v263_v20 }
  0x15   :  { %265 = vmatprep.subr.bf16.mxu0 %v295_v0 }
  0x18   :  { %267 = vmatpush1.bf16.msra.mxu0 %v266_v23 }
  0x19   :  { %268 = vmatprep.subr.bf16.mxu0 %v295_v0 }
  0x1c   :  { %270 = vmatpush1.bf16.msra.mxu0 %v269_v26 }
  0x1d   :  { %271 = vmatprep.subr.bf16.mxu0 %v295_v0 }
  0x20   :  { %273 = vmatpush1.bf16.msra.mxu0 %v272_v29 }
  0x21   :  { %274 = vmatprep.subr.bf16.mxu0 %v295_v0 }
  0x24   :  { %276 = vmatpush1.bf16.msra.mxu0 %v275_v32 }
  0x25   :  { %277 = vmatprep.subr.bf16.mxu0 %v295_v0 }
  0x28   :  { %279 = vmatpush1.bf16.msra.mxu0 %v278_v35 }
  0x29   :  { %280 = vmatprep.subr.bf16.mxu0 %v295_v0 }
  0x2c   :  { %282 = vmatpush1.bf16.msra.mxu0 %v281_v38 }
  0x2d   :  { %283 = vmatprep.subr.bf16.mxu0 %v295_v0 }
  0x30   :  { %285 = vmatpush1.bf16.msra.mxu0 %v284_v41 }
  0x33   :  { %132 = vmatmul.mubr.f32.vlgmr.msra.gmra.mrb[0].mxu0 %v230_v12 }
 0x106   :  { %v133_v48 = vpop.f32.mrb[0].mxu0 }
 0x107   :  { %v134_v49 = vadd.f32 %v229_v47, %v133_v48  ;;  %v135_v50 = vpop.f32.mrb[1].mxu0 }
 0x109   :  { %v137_v51 = vmax.f32 %v134_v49, 0.0 }
 0x10b   :  { %248 = vmatmul.mubr.msk.f32.vlgmr.msra.gmra.mrb[0].mxu1 %vm149_vm2, %v137_v51 }
 0x1de   :  { %v219_v53 = vpop.f32.mrb[0].mxu1 }
 0x1df   :  { %v220_v54 = vadd.f32 %v232_v52, %v219_v53  ;;  %v249_v55 = vpop.f32.mrb[1].mxu1 }
 0x1e1   :  { %224 = vst.msk [vmem:[%s443_s5] sm:$0x3] %vm223_vm3, %v220_v54 }

// kernel: mpnn_forward.2
= control target key start
LH: loop header
LB: loop body
LE: loop exit
PB: predicated region body
PF: predicated region fallthrough
CT: control target
= control target key end

     0   :  { %s4547_s0 = inlined_call_operand.vmem [shape: f32[16,11], index: 0, kind: input, shape index: {}]   ;;  %s4548_s1 = inlined_call_operand.vmem [shape: f32[32,5], index: 1, kind: input, shape index: {}]   ;;  %s4549_s2 = inlined_call_operand.vmem [shape: f32[11,32], index: 2, kind: input, shape index: {}]   ;;  %s4550_s3 = inlined_call_operand.vmem [shape: f32[1,32], index: 3, kind: input, shape index: {}]   ;;  %s4551_s4 = inlined_call_operand.vmem [shape: f32[5,32], index: 4, kind: input, shape index: {}]   ;;  %s4552_s5 = inlined_call_operand.vmem [shape: f32[1,32], index: 5, kind: input, shape index: {}]   ;;  %s4553_s6 = inlined_call_operand.vmem [shape: bf16[32,16], index: 6, kind: input, shape index: {}]   ;;  %s4554_s7 = inlined_call_operand.vmem [shape: bf16[16,32], index: 7, kind: input, shape index: {}]   ;;  %s4555_s8 = inlined_call_operand.vmem [shape: bf16[32,1024], index: 8, kind: input, shape index: {}]   ;;  %s4556_s9 = inlined_call_operand.vmem [shape: bf16[1024,32], index: 9, kind: input, shape index: {}]   ;;  %s4557_s10 = inlined_call_operand.vmem [shape: bf16[64,32], index: 10, kind: input, shape index: {}]   ;;  %s4558_s11 = inlined_call_operand.vmem [shape: f32[1,32], index: 11, kind: input, shape index: {}]   ;;  %s4559_s12 = inlined_call_operand.vmem [shape: bf16[2,32,64], index: 12, kind: input, shape index: {}]   ;;  %s4560_s13 = inlined_call_operand.vmem [shape: f32[2,1,64], index: 13, kind: input, shape index: {}]   ;;  %s4561_s14 = inlined_call_operand.vmem [shape: bf16[2,64,1024], index: 14, kind: input, shape index: {}]   ;;  %s4562_s15 = inlined_call_operand.vmem [shape: f32[2,1,1024], index: 15, kind: input, shape index: {}]   ;;  %s4563_s16 = inlined_call_operand.vmem [shape: bf16[2,64,128], index: 16, kind: input, shape index: {}]   ;;  %s4564_s17 = inlined_call_operand.vmem [shape: f32[2,1,128], index: 17, kind: input, shape index: {}]   ;;  %s4565_s18 = inlined_call_operand.vmem [shape: f32[2,1,32], index: 18, kind: input, shape index: {}]   ;;  %s4566_s19 = inlined_call_operand.vmem [shape: f32[2,1,32], index: 19, kind: input, shape index: {}]   ;;  %s4567_s20 = inlined_call_operand.vmem [shape: f32[16,32], index: 20, kind: output, shape index: {0}]   ;;  %s4568_s21 = inlined_call_operand.vmem [shape: f32[2,16,32], index: 21, kind: output, shape index: {1}]  }
   0x1   :  { %4575 = sst [smem:[#allocation6_spill]] %s4547_s0 }
   0x2   :  { %4576 = sst [smem:[#allocation7_spill]] %s4548_s1 }
   0x3   :  { %4577 = sst [smem:[#allocation8_spill]] %s4549_s2  ;;  %s3856_s2 = smov 0  }
   0x4   :  { %4578 = sst [smem:[#allocation9_spill]] %s4550_s3 }
   0x5   :  { %4579 = sst [smem:[#allocation10_spill]] %s4551_s4 }
   0x6   :  { %4580 = sst [smem:[#allocation11_spill]] %s4552_s5 }
   0x7   :  { %4581 = sst [smem:[#allocation12_spill]] %s4554_s7 }
   0x8   :  { %4582 = sst [smem:[#allocation13_spill]] %s4556_s9 }
   0x9   :  { %4583 = sst [smem:[#allocation14_spill]] %s4557_s10 }
   0xa   :  { %4584 = sst [smem:[#allocation15_spill]] %s4558_s11 }
   0xb   :  { %4585 = sst [smem:[#allocation16_spill]] %s4559_s12 }
   0xc   :  { %4586 = sst [smem:[#allocation17_spill]] %s4561_s14 }
   0xd   :  { %4587 = sst [smem:[#allocation18_spill]] %s4562_s15 }
   0xe LB: > { %4588 = sst [smem:[#allocation5_spill]] %s3737_s2  ;;  %s3219_s25 = sadd.s32 4294967295, %s3737_s2   ;;  %s3737_s2 = sphi %s3856_s2, %s32_s2  }
   0xf   : > { %p3223_p0 = scmp.ge.s32.totalorder %s3737_s2, 1  ;;  %p646_p1 = scmp.lt.s32.totalorder %s3737_s2, 3 }
  0x11   : > { %p647_p2 = pnand %p3223_p0, %p646_p1 }
  0x12   : > { %p732_p3 = scmp.lt.s32.totalorder (!%p647_p2), %s3219_s25, 1  ;;  %s4589_s12 = sld [smem:[#allocation16_spill]] (!%p647_p2) }
  0x13   : > { %650 = sbr.rel (%p647_p2) target bundleno = 2944 (0xb80), region = 100  ;;  %s4590_s14 = sld [smem:[#allocation17_spill]] (!%p647_p2) }
  0x14   : > { %s4591_s15 = sld [smem:[#allocation18_spill]] (!%p647_p2)  ;;  %p3233_p4 = scmp.ne.s32.totalorder (!%p647_p2), %s3219_s25, 0 }
  0x1a   : > { %s3864_s26 = scalar_select %p732_p3, %s3219_s25, 1 }
  0x1b   : > { %772 = sbr.rel (%p3233_p4) target bundleno = 268 (0x10c), region = 104  ;;  %s4592_s28 = sld [smem:[#allocation10_spill]] (!%p3233_p4)  ;;  %vm901_vm0 = vcmask (!%p3233_p4), 1044480   ;;  %vm888_vm1 = vcmask (!%p3233_p4), 39936   ;;  %vm791_vm2 = vcmask (!%p3233_p4), 1042432   ;;  %vm3739_vm3 = vmmov (!%p3233_p4), 1  }
  0x1c   : > { %s3403_s27 = sshll.u32 %s3864_s26, 4  ;;  %s3404_s5 = sshll.u32 %s3864_s26, 8  ;;  %vm3610_vm4 = vmpackc.low (!%p3233_p4), %vm791_vm2, %vm3739_vm3  ;;  %vm784_vm5 = vcmask (!%p3233_p4), 89088   ;;  %vm1002_vm7 = vcmask (!%p3233_p4), 261120  }
  0x1d   : > { %s3874_s30 = scalar_lea.vmem %s4589_s12, %s3403_s27  ;;  %s3880_s1 = scalar_lea.vmem %s4590_s14, %s3404_s5 }
  0x1e   : > { %s3228_s24 = sshll.u32 %s3864_s26, 3  ;;  %s3405_s7 = sshll.u32 %s3864_s26, 5 }
  0x1f   : > { %s3886_s10 = scalar_lea.vmem %s4591_s15, %s3228_s24  ;;  %s3892_s29 = scalar_lea.vmem %s4563_s16, %s3405_s7 }
  0x20   : > { %s756_s12 = scalar_lea.vmem %s4564_s17, %s3864_s26  ;;  %s759_s5 = scalar_lea.vmem %s4565_s18, %s3864_s26 }
  0x21   : > { %s762_s11 = scalar_lea.vmem %s4566_s19, %s3864_s26  ;;  %s3909_s15 = scalar_lea.vmem %s4568_s21, %s3403_s27  ;;  %v880_v0 = vld [vmem:[%s4592_s28] sm:$0x1f] (!%p3233_p4) }
  0x22   : > { %s4593_s9 = sld [smem:[#allocation7_spill]]  ;;  %s4594_s23 = sld [smem:[#allocation8_spill]]  ;;  %3555 = vmatprep.subr.msk.mxu1 %vm901_vm0, %v880_v0 }
  0x23   : > { %s4595_s28 = sld [smem:[#allocation6_spill]]  ;;  %3556 = vmatpush3.msk.msra.mxu1 %vm901_vm0, %v880_v0  ;;  %s4596_s7 = sld [smem:[#allocation11_spill]] }
  0x24   : > { %s4597_s4 = sld [smem:[#allocation9_spill]] }
  0x28   : > { %v876_v1 = vld [vmem:[%s4593_s9] sm:$0xff]  ;;  %v776_v3 = vld [vmem:[%s4594_s23 + $0x8] sm:$0x7]  ;;  %v878_v7 = vld [vmem:[%s4593_s9 + $0x10] sm:$0xff] }
  0x29   : > { %v775_v2 = vld [vmem:[%s4594_s23] sm:$0xff]  ;;  %3557 = vmatprep.mubr.msk.f32.mxu1 %vm888_vm1, %v876_v1  ;;  %v877_v4 = vld [vmem:[%s4593_s9 + $0x8] sm:$0xff]  ;;  %v879_v8 = vld [vmem:[%s4593_s9 + $0x18] sm:$0xff] }
  0x2a   : > { %v773_v5 = vld [vmem:[%s4595_s28] sm:$0xff]  ;;  %v3609_v6 = vpack.c.bf16 %v776_v3, %v775_v2  ;;  %3558 = vmatmul.mubr.msk.f32.vlgmr.msra.gmra.mrb[0].mxu1 %vm888_vm1, %v877_v4  ;;  %v774_v9 = vld [vmem:[%s4595_s28 + $0x8] sm:$0xff] }
  0x2b   : > { %3552 = vmatprep.mubr.msk.f32.mxu0 %vm784_vm5, %v773_v5  ;;  %3560 = vmatprep.mubr.msk.f32.mxu1 %vm888_vm1, %v878_v7  ;;  %v3238_v10 = vld [vmem:[%s4596_s7] ss:$0 sm:$0xff] }
  0x2c   : > { %3611 = vmatprep.subr.msk.bf16.mxu0 %vm3610_vm4, %v3609_v6  ;;  %v3234_v16 = vld [vmem:[%s4597_s4] ss:$0 sm:$0xff] }
  0x2d   : > { %3614 = vmatpush3.bf16.msk.msra.mxu0 %vm3610_vm4, %v3609_v6 }
  0x2e   : > { %3561 = vmatmul.mubr.msk.f32.gmra.mrb[2].mxu1 %vm888_vm1, %v879_v8 }
  0x30   : > { %3553 = vmatmul.mubr.msk.f32.vlgmr.msra.gmra.mrb[0].mxu0 %vm784_vm5, %v774_v9 }
  0xfd   : > { %v3559_v11 = vpop.f32.mrb[0].mxu1 }
  0xfe   : > { %v977_v12 = vadd.f32 %v3559_v11, %v3238_v10  ;;  %v971_v13 = vpop.f32.mrb[1].mxu1 }
  0xff   : > { %v972_v14 = vadd.f32 %v3238_v10, %v971_v13 }
 0x100   : > { %vm991_vm6 = vcmp.gt.f32.partialorder %v977_v12, 0.0  ;;  %v995_v15 = vmul.f32 0.01, %v977_v12 }
 0x101   : > { %vm990_vm8 = vcmp.gt.f32.partialorder %v972_v14, 0.0  ;;  %v994_v17 = vmul.f32 0.01, %v972_v14  ;;  %v3562_v18 = vpop.f32.mrb[2].mxu1 }
 0x102   : > { %v999_v19 = vsel %vm991_vm6, %v977_v12, %v995_v15  ;;  %v987_v21 = vadd.f32 %v3562_v18, %v3238_v10  ;;  %v981_v22 = vpop.f32.mrb[3].mxu1 }
 0x103   : > { %v3554_v20 = vpop.f32.mrb[0].mxu0  ;;  %1008 = vst.msk [vmem:[#allocation4 + $0x8] sm:$0xff] %vm1002_vm7, %v999_v19  ;;  %v998_v23 = vsel %vm990_vm8, %v972_v14, %v994_v17  ;;  %v982_v26 = vadd.f32 %v3238_v10, %v981_v22 }
 0x104   : > { %v867_v24 = vadd.f32 %v3554_v20, %v3234_v16  ;;  %v861_v25 = vpop.f32.mrb[1].mxu0  ;;  %1007 = vst.msk [vmem:[#allocation4] sm:$0xff] %vm1002_vm7, %v998_v23  ;;  %vm993_vm9 = vcmp.gt.f32.partialorder %v987_v21, 0.0  ;;  %v997_v27 = vmul.f32 0.01, %v987_v21 }
 0x105   : > { %v862_v28 = vadd.f32 %v3234_v16, %v861_v25  ;;  %vm992_vm11 = vcmp.gt.f32.partialorder %v982_v26, 0.0  ;;  %v996_v30 = vmul.f32 0.01, %v982_v26 }
 0x106   : > { %vm871_vm10 = vcmp.gt.f32.partialorder %v867_v24, 0.0  ;;  %v873_v29 = vmul.f32 0.01, %v867_v24  ;;  %v1001_v31 = vsel %vm993_vm9, %v987_v21, %v997_v27 }
 0x107   : > { %vm870_vm12 = vcmp.gt.f32.partialorder %v862_v28, 0.0  ;;  %v872_v32 = vmul.f32 0.01, %v862_v28  ;;  %1010 = vst.msk [vmem:[#allocation4 + $0x18] sm:$0xff] %vm1002_vm7, %v1001_v31  ;;  %v1000_v34 = vsel %vm992_vm11, %v982_v26, %v996_v30 }
 0x108   : > { %v875_v33 = vsel %vm871_vm10, %v867_v24, %v873_v29  ;;  %1009 = vst.msk [vmem:[#allocation4 + $0x10] sm:$0xff] %vm1002_vm7, %v1000_v34 }
 0x109   : > { %1004 = vst.msk [vmem:[#allocation2 + $0x8] sm:$0xff] %vm1002_vm7, %v875_v33  ;;  %1006 = vst.msk [vmem:[#allocation3 + $0x8] sm:$0xff] %vm1002_vm7, %v875_v33  ;;  %v874_v35 = vsel %vm870_vm12, %v862_v28, %v872_v32 }
 0x10a   : > { %1012 = vst.msk [vmem:[%s4567_s20 + $0x8] sm:$0xff] %vm1002_vm7, %v875_v33  ;;  %1003 = vst.msk [vmem:[#allocation2] sm:$0xff] %vm1002_vm7, %v874_v35 }
 0x10b   : > { %1005 = vst.msk [vmem:[#allocation3] sm:$0xff] %vm1002_vm7, %v874_v35  ;;  %1011 = vst.msk [vmem:[%s4567_s20] sm:$0xff] %vm1002_vm7, %v874_v35 }
 0x10c PF: > { %v3630_v36 = vld [vmem:[%s3874_s30] sm:$0xff]   ;;  %v3631_v37 = vld [vmem:[%s3874_s30 + $0x8] sm:$0xff]   ;;  %vm1090_vm13 = vcmask 261120   ;;  %v1028_v12 = vld [vmem:[%s3880_s1 + $0x10] sm:$0xff]  ;;  %v3740_v17 = vmov 0   ;;  %s4598_s24 = scalar_lea.vmem %s4560_s13, %s3864_s26  ;;  %vm1353_vm14 = vcmask 523264  }
 0x10d   : > { %3563 = vmatprep.subr.bf16.mxu1 %v3630_v36  ;;  %v1017_v38 = vld [vmem:[#allocation4] sm:$0xff]  ;;  %v1018_v39 = vld [vmem:[#allocation4 + $0x8] sm:$0xff]  ;;  %v1032_v13 = vld [vmem:[%s3880_s1 + $0x30] sm:$0xff]  ;;  %1445 = vmatprep.mubr.bf16.mxu0 %v3740_v17  ;;  %vm1587_vm15 = vcmask 130048   ;;  %s4599_s3 = sld [smem:[#allocation13_spill]]  ;;  %vm3742_vm0 = vmmov 0  }
 0x10e   : > { %3564 = vmatpush3.bf16.msra.mxu1 %v3630_v36  ;;  %v1070_v41 = vpack.c.bf16 %v1018_v39, %v1017_v38  ;;  %v1020_v42 = vld [vmem:[#allocation4 + $0x18] sm:$0xff]  ;;  %v1026_v43 = vld [vmem:[%s3880_s1] sm:$0xff]  ;;  %v1027_v46 = vld [vmem:[%s3880_s1 + $0x8] sm:$0xff]  ;;  %v3254_v15 = vcombine.high %v1028_v12, %v1032_v13  ;;  %v3253_v18 = vcombine.low %v1028_v12, %v1032_v13  ;;  %s4600_s22 = sld [smem:[#allocation12_spill]]  ;;  %s3745_s27 = smov 96  }
 0x10f   : > { %v1019_v40 = vld [vmem:[#allocation4 + $0x10] sm:$0xff]  ;;  %v1030_v44 = vld [vmem:[%s3880_s1 + $0x20] sm:$0xff]  ;;  %3565 = vmatprep.subr.bf16.mxu1 %v3631_v37  ;;  %v1031_v47 = vld [vmem:[%s3880_s1 + $0x28] sm:$0xff]  ;;  %s4601_s0 = sld [smem:[#allocation14_spill]] }
 0x110   : > { %v3250_v45 = vcombine.high %v1026_v43, %v1030_v44  ;;  %v1034_v48 = vld [vmem:[%s3880_s1 + $0x40] sm:$0xff]  ;;  %3567 = vmatprep.mubr.msk.bf16.mxu1 %vm1090_vm13, %v1070_v41  ;;  %v3252_v49 = vcombine.high %v1027_v46, %v1031_v47  ;;  %v3251_v50 = vcombine.low %v1027_v46, %v1031_v47  ;;  %v1035_v52 = vld [vmem:[%s3880_s1 + $0x48] sm:$0xff]  ;;  %v1071_v54 = vpack.c.bf16 %v1020_v42, %v1019_v40  ;;  %v1029_v14 = vld [vmem:[%s3880_s1 + $0x18] sm:$0xff] }
 0x111   : > { %v1038_v51 = vld [vmem:[%s3880_s1 + $0x60] sm:$0xff]  ;;  %v1039_v53 = vld [vmem:[%s3880_s1 + $0x68] sm:$0xff]  ;;  %v3249_v56 = vcombine.low %v1026_v43, %v1030_v44  ;;  %v1033_v16 = vld [vmem:[%s3880_s1 + $0x38] sm:$0xff] }
 0x112   : > { %v3260_v55 = vcombine.high %v1035_v52, %v1039_v53  ;;  %3566 = vmatpush3.bf16.msra.mxu1 %v3631_v37  ;;  %1413 = vmatprep.subr.bf16.mxu0 %v3252_v49  ;;  %v3258_v57 = vcombine.high %v1034_v48, %v1038_v51  ;;  %v3259_v58 = vcombine.low %v1035_v52, %v1039_v53  ;;  %v1042_v60 = vld [vmem:[%s3880_s1 + $0x80] sm:$0xff]  ;;  %v1043_v62 = vld [vmem:[%s3880_s1 + $0x88] sm:$0xff]  ;;  %v1036_v30 = vld [vmem:[%s3880_s1 + $0x50] sm:$0xff] }
 0x113   : > { %1360 = vmatprep.subr.bf16.mxu1 %v3250_v45  ;;  %1414 = vmatpush1.bf16.msra.mxu0 %v3251_v50  ;;  %v3257_v59 = vcombine.low %v1034_v48, %v1038_v51  ;;  %v1046_v61 = vld [vmem:[%s3880_s1 + $0xa0] sm:$0xff]  ;;  %v1047_v0 = vld [vmem:[%s3880_s1 + $0xa8] sm:$0xff]  ;;  %v3255_v19 = vcombine.low %v1029_v14, %v1033_v16  ;;  %v3256_v20 = vcombine.high %v1029_v14, %v1033_v16  ;;  %v1040_v33 = vld [vmem:[%s3880_s1 + $0x70] sm:$0xff] }
 0x114   : > { %1415 = vmatprep.subr.bf16.mxu0 %v3260_v55  ;;  %v3266_v63 = vcombine.high %v1042_v60, %v1046_v61  ;;  %v3265_v1 = vcombine.low %v1042_v60, %v1046_v61  ;;  %v3268_v2 = vcombine.high %v1043_v62, %v1047_v0  ;;  %v3267_v3 = vcombine.low %v1043_v62, %v1047_v0  ;;  %v1050_v4 = vld [vmem:[%s3880_s1 + $0xc0] sm:$0xff]  ;;  %v1051_v6 = vld [vmem:[%s3880_s1 + $0xc8] sm:$0xff]  ;;  %v1037_v34 = vld [vmem:[%s3880_s1 + $0x58] sm:$0xff] }
 0x115   : > { %3568 = vmatmul.mubr.msk.bf16.vlgmr.msra.gmra.mrb[0].mxu1 %vm1090_vm13, %v1071_v54  ;;  %v1054_v5 = vld [vmem:[%s3880_s1 + $0xe0] sm:$0xff]  ;;  %v1055_v8 = vld [vmem:[%s3880_s1 + $0xe8] sm:$0xff]  ;;  %v1041_v35 = vld [vmem:[%s3880_s1 + $0x78] sm:$0xff]  ;;  %v3262_v40 = vcombine.high %v1036_v30, %v1040_v33  ;;  %v3261_v46 = vcombine.low %v1036_v30, %v1040_v33 }
 0x116   : > { %1361 = vmatpush1.bf16.msra.mxu1 %v3249_v56  ;;  %v3274_v7 = vcombine.high %v1050_v4, %v1054_v5  ;;  %v3273_v9 = vcombine.low %v1050_v4, %v1054_v5  ;;  %v3276_v10 = vcombine.high %v1051_v6, %v1055_v8  ;;  %v3275_v11 = vcombine.low %v1051_v6, %v1055_v8  ;;  %v3244_v21 = vld [vmem:[%s4598_s24] ss:$0 sm:$0xff]  ;;  %v1044_v42 = vld [vmem:[%s3880_s1 + $0x90] sm:$0xff]  ;;  %v1045_v44 = vld [vmem:[%s3880_s1 + $0x98] sm:$0xff] }
 0x117   : > { %1362 = vmatprep.subr.bf16.mxu1 %v3258_v57  ;;  %1416 = vmatpush1.bf16.msra.mxu0 %v3259_v58  ;;  %v3264_v41 = vcombine.high %v1037_v34, %v1041_v35  ;;  %v1048_v43 = vld [vmem:[%s3880_s1 + $0xb0] sm:$0xff]  ;;  %v1049_v45 = vld [vmem:[%s3880_s1 + $0xb8] sm:$0xff]  ;;  %v3263_v47 = vcombine.low %v1037_v34, %v1041_v35  ;;  %v1013_v58 = vld [vmem:[#allocation2] sm:$0xff] }
 0x118   : > { %1417 = vmatprep.subr.bf16.mxu0 %v3268_v2  ;;  %1392 = vmatprep.mubr.bf16.mxu1 %v3740_v17  ;;  %v3270_v48 = vcombine.high %v1044_v42, %v1048_v43  ;;  %v3272_v49 = vcombine.high %v1045_v44, %v1049_v45  ;;  %v1052_v50 = vld [vmem:[%s3880_s1 + $0xd0] sm:$0xff]  ;;  %v1053_v52 = vld [vmem:[%s3880_s1 + $0xd8] sm:$0xff]  ;;  %v3269_v54 = vcombine.low %v1044_v42, %v1048_v43  ;;  %v3633_v0 = vld [vmem:[%s4553_s6 + $0x8] sm:$0xff]  }
 0x119   : > { %v1056_v51 = vld [vmem:[%s3880_s1 + $0xf0] sm:$0xff]  ;;  %v1057_v53 = vld [vmem:[%s3880_s1 + $0xf8] sm:$0xff]  ;;  %v3271_v55 = vcombine.low %v1045_v44, %v1049_v45  ;;  %v1649_v2 = vld [vmem:[%s4555_s8 + $0x20] sm:$0xff] }
 0x11a   : > { %1363 = vmatpush1.bf16.msra.mxu1 %v3257_v59  ;;  %v3278_v56 = vcombine.high %v1052_v50, %v1056_v51  ;;  %v3280_v57 = vcombine.high %v1053_v52, %v1057_v53  ;;  %v1014_v59 = vld [vmem:[#allocation2 + $0x8] sm:$0xff]  ;;  %v3277_v60 = vcombine.low %v1052_v50, %v1056_v51  ;;  %v3279_v61 = vcombine.low %v1053_v52, %v1057_v53 }
 0x11b   : > { %1364 = vmatprep.subr.bf16.mxu1 %v3266_v63  ;;  %1418 = vmatpush1.bf16.msra.mxu0 %v3267_v3  ;;  %v1576_v62 = vpack.c.bf16 %v1014_v59, %v1013_v58  ;;  %v3632_v63 = vld [vmem:[%s4553_s6] sm:$0xff]   ;;  %v1646_v3 = vld [vmem:[%s4555_s8 + $0x8] sm:$0xff] }
 0x11c   : > { %1419 = vmatprep.subr.bf16.mxu0 %v3276_v10  ;;  %v1650_v6 = vld [vmem:[%s4555_s8 + $0x28] sm:$0xff]  ;;  %v1657_v10 = vld [vmem:[%s4555_s8 + $0x60] sm:$0xff] }
 0x11d   : > { %v3296_v8 = vcombine.high %v1646_v3, %v1650_v6  ;;  %v1658_v13 = vld [vmem:[%s4555_s8 + $0x68] sm:$0xff] }
 0x11e   : > { %1365 = vmatpush1.bf16.msra.mxu1 %v3265_v1  ;;  %v1645_v1 = vld [vmem:[%s4555_s8] sm:$0xff] }
 0x11f   : > { %1366 = vmatprep.subr.bf16.mxu1 %v3274_v7  ;;  %1420 = vmatpush1.bf16.msra.mxu0 %v3275_v11  ;;  %v3293_v4 = vcombine.low %v1645_v1, %v1649_v2  ;;  %v3294_v5 = vcombine.high %v1645_v1, %v1649_v2  ;;  %v3295_v7 = vcombine.low %v1646_v3, %v1650_v6  ;;  %v1654_v11 = vld [vmem:[%s4555_s8 + $0x48] sm:$0xff] }
 0x120   : > { %1519 = vmatprep.subr.bf16.mxu0 %v3256_v20  ;;  %v3304_v16 = vcombine.high %v1654_v11, %v1658_v13  ;;  %v1648_v20 = vld [vmem:[%s4555_s8 + $0x18] sm:$0xff] }
 0x122   : > { %1367 = vmatpush1.bf16.msra.mxu1 %v3273_v9  ;;  %v1653_v9 = vld [vmem:[%s4555_s8 + $0x40] sm:$0xff] }
 0x123   : > { %1466 = vmatprep.subr.bf16.mxu1 %v3254_v15  ;;  %v3302_v12 = vcombine.high %v1653_v9, %v1657_v10  ;;  %v3301_v14 = vcombine.low %v1653_v9, %v1657_v10  ;;  %v3303_v15 = vcombine.low %v1654_v11, %v1658_v13  ;;  %v3635_v9 = vld [vmem:[%s4599_s3 + $0xc0] sm:$0xff]   ;;  %v3639_v13 = vld [vmem:[%s4599_s3 + $0xc8] sm:$0xff]  }
 0x124   : > { %v3636_v10 = vld [vmem:[%s4599_s3] sm:$0xff]  }
 0x125   : > { %v3637_v11 = vld [vmem:[%s4599_s3 + $0x80] sm:$0xff]  }
 0x1e8   : > { %v3569_v22 = vpop.f32.mrb[0].mxu1 }
 0x1e9   : > { %v1140_v23 = vadd.f32 %v3569_v22, %v3244_v21  ;;  %v1131_v24 = vpop.f32.mrb[1].mxu1  ;;  %v1652_v22 = vld [vmem:[%s4555_s8 + $0x38] sm:$0xff] }
 0x1ea   : > { %v1132_v25 = vadd.f32 %v3244_v21, %v1131_v24  ;;  %v3570_v26 = vpop.f32.mrb[2].mxu1  ;;  %v3299_v24 = vcombine.low %v1648_v20, %v1652_v22 }
 0x1eb   : > { %v1143_v27 = vadd.f32 %v3570_v26, %v3244_v21  ;;  %v1134_v28 = vpop.f32.mrb[3].mxu1  ;;  %v1148_v31 = vmax.f32 %v1140_v23, 0.0 }
 0x1ec   : > { %v1135_v29 = vadd.f32 %v3244_v21, %v1134_v28  ;;  %v1146_v36 = vmax.f32 %v1132_v25, 0.0  ;;  %v3300_v25 = vcombine.high %v1648_v20, %v1652_v22  ;;  %v3646_v20 = vld [vmem:[%s4599_s3 + $0x58] sm:$0xff]  }
 0x1ed   : > { %v1149_v32 = vmax.f32 %v1143_v27, 0.0  ;;  %v3648_v22 = vld [vmem:[%s4599_s3 + $0x18] sm:$0xff]  }
 0x1ee   : > { %v1147_v37 = vmax.f32 %v1135_v29, 0.0 }
 0x1ef   : > { %v1151_v38 = vpack.c.bf16 %v1149_v32, %v1148_v31 }
 0x1f0   : > { %v1150_v39 = vpack.c.bf16 %v1147_v37, %v1146_v36 }
 0x1f2   : > { %3281 = vmatmul.mubr.msk.bf16.vlgmr.msra.gmra.mrb[4].mxu1 %vm1353_vm14, %v1150_v39  ;;  %3283 = vmatmul.mubr.msk.bf16.vlgmr.msra.gmra.mrb[0].mxu0 %vm1353_vm14, %v1150_v39 }
 0x1f3   : > { %1467 = vmatpush1.bf16.msra.mxu1 %v3253_v18  ;;  %1520 = vmatpush1.bf16.msra.mxu0 %v3255_v19  ;;  %v1647_v18 = vld [vmem:[%s4555_s8 + $0x10] sm:$0xff] }
 0x1f4   : > { %1468 = vmatprep.subr.bf16.mxu1 %v3262_v40  ;;  %1521 = vmatprep.subr.bf16.mxu0 %v3264_v41  ;;  %v1651_v19 = vld [vmem:[%s4555_s8 + $0x30] sm:$0xff] }
 0x1f5   : > { %1402 = vmatprep.mubr.bf16.mxu1 %v3740_v17  ;;  %1455 = vmatprep.mubr.bf16.mxu0 %v3740_v17  ;;  %v3298_v21 = vcombine.high %v1647_v18, %v1651_v19  ;;  %v3297_v23 = vcombine.low %v1647_v18, %v1651_v19  ;;  %v3644_v18 = vld [vmem:[%s4599_s3 + $0x10] sm:$0xff]  }
 0x1f6   : > { %v3645_v19 = vld [vmem:[%s4599_s3 + $0x90] sm:$0xff]  }
 0x1f7   : > { %1469 = vmatpush1.bf16.msra.mxu1 %v3261_v46  ;;  %1522 = vmatpush1.bf16.msra.mxu0 %v3263_v47 }
 0x1f8   : > { %1470 = vmatprep.subr.bf16.mxu1 %v3270_v48  ;;  %1523 = vmatprep.subr.bf16.mxu0 %v3272_v49 }
 0x1fa   : > { %3282 = vmatmul.mubr.msk.bf16.gmra.mrb[8].mxu1 %vm1353_vm14, %v1151_v38  ;;  %3284 = vmatmul.mubr.msk.bf16.gmra.mrb[4].mxu0 %vm1353_vm14, %v1151_v38 }
 0x1fb   : > { %1471 = vmatpush1.bf16.msra.mxu1 %v3269_v54  ;;  %1524 = vmatpush1.bf16.msra.mxu0 %v3271_v55 }
 0x1fc   : > { %1472 = vmatprep.subr.bf16.mxu1 %v3278_v56  ;;  %1525 = vmatprep.subr.bf16.mxu0 %v3280_v57 }
 0x1fd   : > { %1498 = vmatprep.mubr.bf16.mxu1 %v3740_v17  ;;  %1551 = vmatprep.mubr.bf16.mxu0 %v3740_v17 }
 0x1ff   : > { %1473 = vmatpush1.bf16.msra.mxu1 %v3277_v60  ;;  %1526 = vmatpush1.bf16.msra.mxu0 %v3279_v61  ;;  %v1655_v60 = vld [vmem:[%s4555_s8 + $0x50] sm:$0xff] }
 0x200   : > { %3571 = vmatprep.subr.bf16.mxu1 %v1576_v62  ;;  %1747 = vmatprep.subr.bf16.mxu0 %v3294_v5 }
 0x202   : > { %3285 = vmatmul.mubr.msk.bf16.vlgmr.msra.gmra.mrb[12].mxu1 %vm1353_vm14, %v1150_v39  ;;  %3287 = vmatmul.mubr.msk.bf16.vlgmr.msra.gmra.mrb[8].mxu0 %vm1353_vm14, %v1150_v39 }
 0x203   : > { %3572 = vmatpush3.bf16.msra.mxu1 %v1576_v62  ;;  %1508 = vmatprep.mubr.bf16.mxu1 %v3740_v17  ;;  %v1659_v62 = vld [vmem:[%s4555_s8 + $0x70] sm:$0xff] }
 0x204   : > { %1561 = vmatprep.mubr.bf16.mxu0 %v3740_v17  ;;  %1748 = vmatpush1.bf16.msra.mxu0 %v3293_v4  ;;  %v3306_v4 = vcombine.high %v1655_v60, %v1659_v62  ;;  %v3305_v6 = vcombine.low %v1655_v60, %v1659_v62  ;;  %v3654_v60 = vld [vmem:[%s4599_s3 + $0x68] sm:$0xff]  }
 0x205   : > { %1800 = vmatprep.subr.bf16.mxu1 %v3296_v8  ;;  %1749 = vmatprep.subr.bf16.mxu0 %v3302_v12  ;;  %v3634_v8 = vld [vmem:[%s4599_s3 + $0x40] sm:$0xff]   ;;  %v3638_v12 = vld [vmem:[%s4599_s3 + $0x48] sm:$0xff]  }
 0x206   : > { %v3656_v62 = vld [vmem:[%s4599_s3 + $0x28] sm:$0xff]  }
 0x208   : > { %1750 = vmatpush1.bf16.msra.mxu0 %v3301_v14  ;;  %v3640_v14 = vld [vmem:[%s4599_s3 + $0x8] sm:$0xff]  }
 0x209   : > { %1853 = vmatprep.subr.bf16.mxu0 %v3298_v21  ;;  %v3647_v21 = vld [vmem:[%s4599_s3 + $0xd8] sm:$0xff]  }
 0x20a   : > { %3286 = vmatmul.mubr.msk.bf16.gmra.mrb[16].mxu1 %vm1353_vm14, %v1151_v38  ;;  %3288 = vmatmul.mubr.msk.bf16.gmra.mrb[12].mxu0 %vm1353_vm14, %v1151_v38 }
 0x20b   : > { %3573 = vmatprep.mubr.msk.bf16.mxu1 %vm1587_vm15, %v3632_v63  ;;  %1779 = vmatprep.mubr.bf16.mxu0 %v3740_v17  ;;  %v1656_v63 = vld [vmem:[%s4555_s8 + $0x58] sm:$0xff] }
 0x212   : > { %3574 = vmatmul.mubr.msk.bf16.vlgmr.msra.gmra.mrb[20].mxu1 %vm1587_vm15, %v3633_v0  ;;  %v1660_v0 = vld [vmem:[%s4555_s8 + $0x78] sm:$0xff] }
 0x213   : > { %1832 = vmatprep.mubr.bf16.mxu1 %v3740_v17  ;;  %1801 = vmatpush1.bf16.msra.mxu1 %v3295_v7  ;;  %v3308_v5 = vcombine.high %v1656_v63, %v1660_v0  ;;  %v3307_v7 = vcombine.low %v1656_v63, %v1660_v0  ;;  %v3657_v63 = vld [vmem:[%s4599_s3 + $0xa8] sm:$0xff]   ;;  %v3658_v0 = vld [vmem:[%s4599_s3 + $0x70] sm:$0xff]  }
 0x214   : > { %1802 = vmatprep.subr.bf16.mxu1 %v3304_v16  ;;  %v3642_v16 = vld [vmem:[%s4599_s3 + $0x50] sm:$0xff]  }
 0x217   : > { %1803 = vmatpush1.bf16.msra.mxu1 %v3303_v15  ;;  %v3641_v15 = vld [vmem:[%s4599_s3 + $0x88] sm:$0xff]  }
 0x218   : > { %1906 = vmatprep.subr.bf16.mxu1 %v3300_v25  ;;  %v3651_v25 = vld [vmem:[%s4599_s3 + $0xe0] sm:$0xff]  }
 0x2c5   : > { %v4065_v26 = vpop.f32.mrb[4].mxu1  ;;  %v4067_v27 = vpop.f32.mrb[0].mxu0 }
 0x2c6   : > { %v4069_v28 = vpop.f32.mrb[5].mxu1  ;;  %v4071_v29 = vpop.f32.mrb[1].mxu0 }
 0x2c7   : > { %v4073_v30 = vpop.f32.mrb[6].mxu1  ;;  %v4075_v31 = vpop.f32.mrb[2].mxu0 }
 0x2c8   : > { %v4077_v32 = vpop.f32.mrb[7].mxu1  ;;  %v4079_v33 = vpop.f32.mrb[3].mxu0 }
 0x2cd   : > { %v4081_v34 = vpop.f32.mrb[8].mxu1  ;;  %v4083_v35 = vpop.f32.mrb[4].mxu0 }
 0x2ce   : > { %v4085_v36 = vpop.f32.mrb[9].mxu1  ;;  %v4087_v37 = vpop.f32.mrb[5].mxu0 }
 0x2cf   : > { %v4089_v38 = vpop.f32.mrb[10].mxu1  ;;  %v4091_v39 = vpop.f32.mrb[6].mxu0 }
 0x2d0   : > { %v4093_v40 = vpop.f32.mrb[11].mxu1  ;;  %v4095_v41 = vpop.f32.mrb[7].mxu0 }
 0x2d5   : > { %v4097_v42 = vpop.f32.mrb[12].mxu1  ;;  %v4099_v43 = vpop.f32.mrb[8].mxu0 }
 0x2d6   : > { %v4101_v44 = vpop.f32.mrb[13].mxu1  ;;  %v4103_v45 = vpop.f32.mrb[9].mxu0 }
 0x2d7   : > { %v4105_v46 = vpop.f32.mrb[14].mxu1  ;;  %v4107_v47 = vpop.f32.mrb[10].mxu0 }
 0x2d8   : > { %v4109_v48 = vpop.f32.mrb[15].mxu1  ;;  %v4111_v49 = vpop.f32.mrb[11].mxu0 }
 0x2dd   : > { %v4113_v50 = vpop.f32.mrb[16].mxu1  ;;  %v4115_v51 = vpop.f32.mrb[12].mxu0 }
 0x2de   : > { %v4117_v52 = vpop.f32.mrb[17].mxu1  ;;  %v4119_v53 = vpop.f32.mrb[13].mxu0 }
 0x2df   : > { %v4121_v54 = vpop.f32.mrb[18].mxu1  ;;  %v4123_v55 = vpop.f32.mrb[14].mxu0 }
 0x2e0   : > { %v4125_v56 = vpop.f32.mrb[19].mxu1  ;;  %v4127_v57 = vpop.f32.mrb[15].mxu0 }
 0x2e5   : > { %v3575_v58 = vpop.f32.mrb[20].mxu1 }
 0x2e6   : > { %v1628_v59 = vpop.f32.mrb[21].mxu1 }
 0x2e7   : > { %v3576_v61 = vpop.f32.mrb[22].mxu1 }
 0x2e8   : > { %v1644_v1 = vpack.c.bf16 %v3576_v61, %v3575_v58  ;;  %v1631_v2 = vpop.f32.mrb[23].mxu1  ;;  %v3652_v58 = vld [vmem:[%s4599_s3 + $0x20] sm:$0xff]   ;;  %v3655_v61 = vld [vmem:[%s4599_s3 + $0xe8] sm:$0xff]  }
 0x2e9   : > { %v1643_v3 = vpack.c.bf16 %v1631_v2, %v1628_v59  ;;  %v3653_v59 = vld [vmem:[%s4599_s3 + $0xa0] sm:$0xff]   ;;  %v3660_v2 = vld [vmem:[%s4599_s3 + $0x30] sm:$0xff]  }
 0x2eb   : > { %3309 = vmatmul.mubr.msk.bf16.vlgmr.msra.gmra.mrb[16].mxu0 %vm1090_vm13, %v1643_v3  ;;  %3311 = vmatmul.mubr.msk.bf16.vlgmr.msra.gmra.mrb[24].mxu1 %vm1090_vm13, %v1643_v3 }
 0x2ec   : > { %1789 = vmatprep.mubr.bf16.mxu0 %v3740_v17  ;;  %1842 = vmatprep.mubr.bf16.mxu1 %v3740_v17 }
 0x2ed   : > { %1854 = vmatpush1.bf16.msra.mxu0 %v3297_v23  ;;  %1907 = vmatpush1.bf16.msra.mxu1 %v3299_v24  ;;  %v3649_v23 = vld [vmem:[%s4599_s3 + $0x98] sm:$0xff]   ;;  %v3650_v24 = vld [vmem:[%s4599_s3 + $0x60] sm:$0xff]  }
 0x2ee   : > { %1855 = vmatprep.subr.bf16.mxu0 %v3306_v4  ;;  %1908 = vmatprep.subr.bf16.mxu1 %v3308_v5  ;;  %v3662_v4 = vld [vmem:[%s4599_s3 + $0x78] sm:$0xff]  }
 0x2ef   : > { %v3663_v5 = vld [vmem:[%s4599_s3 + $0xf8] sm:$0xff]  }
 0x2f1   : > { %1856 = vmatpush1.bf16.msra.mxu0 %v3305_v6  ;;  %1909 = vmatpush1.bf16.msra.mxu1 %v3307_v7  ;;  %v3664_v6 = vld [vmem:[%s4599_s3 + $0x38] sm:$0xff]  }
 0x2f2   : > { %3423 = vmatprep.subr.bf16.mxu0 %v3634_v8  ;;  %3451 = vmatprep.subr.bf16.mxu1 %v3635_v9  ;;  %v3665_v7 = vld [vmem:[%s4599_s3 + $0xb8] sm:$0xff]   ;;  %v3666_v8 = vld [vmem:[%s4599_s3 + $0x140] sm:$0xff]  }
 0x2f3   : > { %3310 = vmatmul.mubr.msk.bf16.gmra.mrb[20].mxu0 %vm1090_vm13, %v1644_v1  ;;  %3312 = vmatmul.mubr.msk.bf16.gmra.mrb[28].mxu1 %vm1090_vm13, %v1644_v1  ;;  %v3667_v9 = vld [vmem:[%s4599_s3 + $0x1c0] sm:$0xff]  }
 0x2f4   : > { %1885 = vmatprep.mubr.bf16.mxu0 %v3740_v17  ;;  %1938 = vmatprep.mubr.bf16.mxu1 %v3740_v17 }
 0x2fb   : > { %3313 = vmatmul.mubr.msk.bf16.vlgmr.msra.gmra.mrb[24].mxu0 %vm1090_vm13, %v1643_v3  ;;  %3315 = vmatmul.mubr.msk.bf16.vlgmr.msra.gmra.mrb[32].mxu1 %vm1090_vm13, %v1643_v3  ;;  %v3661_v3 = vld [vmem:[%s4599_s3 + $0xb0] sm:$0xff]  }
 0x2fc   : > { %1895 = vmatprep.mubr.bf16.mxu0 %v3740_v17  ;;  %1948 = vmatprep.mubr.bf16.mxu1 %v3740_v17  ;;  %v3643_v17 = vld [vmem:[%s4599_s3 + $0xd0] sm:$0xff]  }
 0x2fd   : > { %3424 = vmatpush3.bf16.msra.mxu0 %v3636_v10  ;;  %3452 = vmatpush3.bf16.msra.mxu1 %v3637_v11  ;;  %v1153_v10 = vlaneseq }
 0x2fe   : > { %3425 = vmatprep.subr.bf16.mxu0 %v3638_v12  ;;  %3453 = vmatprep.subr.bf16.mxu1 %v3639_v13 }
 0x2ff   : > { %v4257_v11 = vshrl.u32 %v1153_v10, 7 }
 0x301   : > { %3426 = vmatpush3.bf16.msra.mxu0 %v3640_v14  ;;  %3454 = vmatpush3.bf16.msra.mxu1 %v3641_v15  ;;  %v1155_v12 = vsub.s32 0, %v4257_v11  ;;  %v1163_v13 = vsub.s32 2, %v4257_v11  ;;  %v4262_v14 = vld [vmem:[%s3886_s10] sm:$0xff]  ;;  %v1159_v15 = vsub.s32 1, %v4257_v11  ;;  %s3743_s10 = smov 32  }
 0x302   : > { %3427 = vmatprep.subr.bf16.mxu0 %v3642_v16  ;;  %3455 = vmatprep.subr.bf16.mxu1 %v3643_v17  ;;  %v1167_v16 = vsub.s32 3, %v4257_v11 }
 0x303   : > { %3314 = vmatmul.mubr.msk.bf16.gmra.mrb[28].mxu0 %vm1090_vm13, %v1644_v1  ;;  %3316 = vmatmul.mubr.msk.bf16.gmra.mrb[36].mxu1 %vm1090_vm13, %v1644_v1  ;;  %v3659_v1 = vld [vmem:[%s4599_s3 + $0xf0] sm:$0xff]   ;;  %v1156_v17 = vrot.slane %v4262_v14, %v1155_v12 }
 0x305   : > { %3428 = vmatpush3.bf16.msra.mxu0 %v3644_v18  ;;  %3456 = vmatpush3.bf16.msra.mxu1 %v3645_v19  ;;  %v1164_v18 = vrot.slane %v4262_v14, %v1163_v13  ;;  %v1160_v19 = vrot.slane %v4262_v14, %v1159_v15  ;;  %v3668_v15 = vld [vmem:[%s4599_s3 + $0x100] sm:$0xff]  }
 0x306   : > { %3429 = vmatprep.subr.bf16.mxu0 %v3646_v20  ;;  %3457 = vmatprep.subr.bf16.mxu1 %v3647_v21  ;;  %v1168_v20 = vrot.slane %v4262_v14, %v1167_v16  ;;  %v1395_v21 = vadd.f32 %v4065_v26, %v1156_v17  ;;  %v3669_v16 = vld [vmem:[%s4599_s3 + $0x180] sm:$0xff]  }
 0x307   : > { %v1401_v26 = vadd.f32 %v4077_v32, %v1160_v19  ;;  %v1175_v32 = vsub.s32 5, %v4257_v11 }
 0x309   : > { %3430 = vmatpush3.bf16.msra.mxu0 %v3648_v22  ;;  %3458 = vmatpush3.bf16.msra.mxu1 %v3649_v23  ;;  %v1448_v22 = vadd.f32 %v4067_v27, %v1164_v18  ;;  %v1397_v23 = vadd.f32 %v4069_v28, %v1160_v19  ;;  %v1454_v27 = vadd.f32 %v4079_v33, %v1168_v20 }
 0x30a   : > { %3431 = vmatprep.subr.bf16.mxu0 %v3650_v24  ;;  %3459 = vmatprep.subr.bf16.mxu1 %v3651_v25  ;;  %v1450_v24 = vadd.f32 %v4071_v29, %v1168_v20  ;;  %v1171_v25 = vsub.s32 4, %v4257_v11 }
 0x30c   : > { %v4281_v12 = vrot.slane %v4262_v14, %v1171_v25  ;;  %v3670_v25 = vld [vmem:[%s4599_s3 + $0x148] sm:$0xff]  }
 0x30d   : > { %3432 = vmatpush3.bf16.msra.mxu0 %v3652_v58  ;;  %3460 = vmatpush3.bf16.msra.mxu1 %v3653_v59 }
 0x30e   : > { %3433 = vmatprep.subr.bf16.mxu0 %v3654_v60  ;;  %3461 = vmatprep.subr.bf16.mxu1 %v3655_v61  ;;  %v1399_v60 = vadd.f32 %v4073_v30, %v1156_v17  ;;  %v1452_v61 = vadd.f32 %v4075_v31, %v1164_v18 }
 0x311   : > { %3434 = vmatpush3.bf16.msra.mxu0 %v3656_v62  ;;  %3462 = vmatpush3.bf16.msra.mxu1 %v3657_v63 }
 0x312   : > { %3435 = vmatprep.subr.bf16.mxu0 %v3658_v0  ;;  %3463 = vmatprep.subr.bf16.mxu1 %v3659_v1 }
 0x315   : > { %3436 = vmatpush3.bf16.msra.mxu0 %v3660_v2  ;;  %3464 = vmatpush3.bf16.msra.mxu1 %v3661_v3 }
 0x316   : > { %3437 = vmatprep.subr.bf16.mxu0 %v3662_v4  ;;  %3465 = vmatprep.subr.bf16.mxu1 %v3663_v5  ;;  %v1179_v4 = vsub.s32 6, %v4257_v11 }
 0x319   : > { %3438 = vmatpush3.bf16.msra.mxu0 %v3664_v6  ;;  %3466 = vmatpush3.bf16.msra.mxu1 %v3665_v7 }
 0x31a   : > { %3479 = vmatprep.subr.bf16.mxu0 %v3666_v8  ;;  %3507 = vmatprep.subr.bf16.mxu1 %v3667_v9 }
 0x3be   : > { %v1781_v58 = vpop.f32.mrb[16].mxu0  ;;  %v1834_v59 = vpop.f32.mrb[24].mxu1 }
 0x3bf   : > { %v1959_v62 = vmul.f32 %v1781_v58, %v1395_v21  ;;  %v1961_v63 = vmul.f32 %v1834_v59, %v1448_v22  ;;  %v1783_v0 = vpop.f32.mrb[17].mxu0  ;;  %v1836_v1 = vpop.f32.mrb[25].mxu1  ;;  %v1405_v21 = vadd.f32 %v4081_v34, %v1156_v17  ;;  %v1458_v22 = vadd.f32 %v4083_v35, %v1164_v18  ;;  %v3671_v58 = vld [vmem:[%s4599_s3 + $0x1c8] sm:$0xff]  }
 0x3c0   : > { %v1960_v2 = vmul.f32 %v1783_v0, %v1397_v23  ;;  %v1962_v28 = vmul.f32 %v1836_v1, %v1450_v24  ;;  %v1785_v3 = vpop.f32.mrb[18].mxu0  ;;  %v1838_v29 = vpop.f32.mrb[26].mxu1  ;;  %v1407_v23 = vadd.f32 %v4085_v36, %v1160_v19  ;;  %v4294_v24 = vrot.slane %v4262_v14, %v1179_v4 }
 0x3c1   : > { %v1967_v5 = vmul.f32 %v1785_v3, %v1399_v60  ;;  %v1969_v6 = vmul.f32 %v1838_v29, %v1452_v61  ;;  %v1787_v7 = vpop.f32.mrb[19].mxu0  ;;  %v1840_v30 = vpop.f32.mrb[27].mxu1  ;;  %v1460_v59 = vadd.f32 %v4087_v37, %v1168_v20  ;;  %v1409_v60 = vadd.f32 %v4089_v38, %v1156_v17  ;;  %v3672_v17 = vld [vmem:[%s4599_s3 + $0x108] sm:$0xff]   ;;  %v3675_v3 = vld [vmem:[%s4599_s3 + $0x1d0] sm:$0xff]  }
 0x3c2   : > { %v1968_v8 = vmul.f32 %v1787_v7, %v1401_v26  ;;  %v1970_v31 = vmul.f32 %v1840_v30, %v1454_v27  ;;  %v1462_v34 = vadd.f32 %v4091_v39, %v1164_v18  ;;  %v1183_v35 = vsub.s32 7, %v4257_v11 }
 0x3c3   : > { %v1991_v9 = vpack.c.bf16 %v1967_v5, %v1959_v62  ;;  %v1993_v10 = vpack.c.bf16 %v1969_v6, %v1961_v63  ;;  %v1411_v62 = vadd.f32 %v4093_v40, %v1160_v19  ;;  %v1464_v37 = vadd.f32 %v4095_v41, %v1168_v20  ;;  %v3673_v40 = vld [vmem:[%s4599_s3 + $0x188] sm:$0xff]  }
 0x3c4   : > { %v1992_v33 = vpack.c.bf16 %v1968_v8, %v1960_v2  ;;  %v1994_v13 = vpack.c.bf16 %v1970_v31, %v1962_v28  ;;  %v4315_v18 = vrot.slane %v4262_v14, %v1175_v32  ;;  %v3674_v28 = vld [vmem:[%s4599_s3 + $0x150] sm:$0xff]   ;;  %v4324_v29 = vrot.slane %v4262_v14, %v1183_v35 }
 0x3c5   : > { %v3676_v31 = vld [vmem:[%s4599_s3 + $0x110] sm:$0xff]   ;;  %v1501_v14 = vadd.f32 %v4097_v42, %v4281_v12  ;;  %v1505_v42 = vadd.f32 %v4105_v46, %v4281_v12 }
 0x3c6   : > { %v1791_v36 = vpop.f32.mrb[20].mxu0  ;;  %v1844_v61 = vpop.f32.mrb[28].mxu1  ;;  %2551 = vmatprep.mubr.bf16.mxu0 %v1992_v33  ;;  %2600 = vmatprep.mubr.bf16.mxu1 %v1994_v13  ;;  %v1503_v32 = vadd.f32 %v4101_v44, %v4315_v18  ;;  %v3678_v33 = vld [vmem:[%s4599_s3 + $0x158] sm:$0xff]  }
 0x3c7   : > { %v1975_v63 = vmul.f32 %v1791_v36, %v1405_v21  ;;  %v1977_v0 = vmul.f32 %v1844_v61, %v1458_v22  ;;  %v1793_v1 = vpop.f32.mrb[21].mxu0  ;;  %v1846_v26 = vpop.f32.mrb[29].mxu1  ;;  %2552 = vmatmul.mubr.bf16.vlgmr.msra.gmra.mrb[32].mxu0 %v1991_v9  ;;  %2601 = vmatmul.mubr.bf16.vlgmr.msra.gmra.mrb[40].mxu1 %v1993_v10  ;;  %v3677_v9 = vld [vmem:[%s4599_s3 + $0x190] sm:$0xff]   ;;  %v1554_v10 = vadd.f32 %v4099_v43, %v4294_v24  ;;  %v3679_v13 = vld [vmem:[%s4599_s3 + $0x1d8] sm:$0xff]  }
 0x3c8   : > { %v1976_v27 = vmul.f32 %v1793_v1, %v1407_v23  ;;  %v1978_v38 = vmul.f32 %v1846_v26, %v1460_v59  ;;  %3480 = vmatpush3.bf16.msra.mxu0 %v3668_v15  ;;  %3508 = vmatpush3.bf16.msra.mxu1 %v3669_v16  ;;  %v1795_v39 = vpop.f32.mrb[22].mxu0  ;;  %v1848_v11 = vpop.f32.mrb[30].mxu1  ;;  %v1556_v15 = vadd.f32 %v4103_v45, %v4324_v29 }
 0x3c9   : > { %v1983_v19 = vmul.f32 %v1795_v39, %v1409_v60  ;;  %v1985_v2 = vmul.f32 %v1848_v11, %v1462_v34  ;;  %v1797_v41 = vpop.f32.mrb[23].mxu0  ;;  %v1850_v20 = vpop.f32.mrb[31].mxu1  ;;  %3481 = vmatprep.subr.bf16.mxu0 %v3670_v25  ;;  %3509 = vmatprep.subr.bf16.mxu1 %v3671_v58  ;;  %v1558_v43 = vadd.f32 %v4107_v47, %v4294_v24  ;;  %v3681_v34 = vld [vmem:[%s4599_s3 + $0x198] sm:$0xff]   ;;  %v3684_v39 = vld [vmem:[%s4599_s3 + $0x120] sm:$0xff]  }
 0x3ca   : > { %v1984_v4 = vmul.f32 %v1797_v41, %v1411_v62  ;;  %v1986_v5 = vmul.f32 %v1850_v20, %v1464_v37  ;;  %v1507_v21 = vadd.f32 %v4109_v48, %v4315_v18  ;;  %v1560_v45 = vadd.f32 %v4111_v49, %v4324_v29  ;;  %v3680_v48 = vld [vmem:[%s4599_s3 + $0x118] sm:$0xff]   ;;  %v3682_v62 = vld [vmem:[%s4599_s3 + $0x160] sm:$0xff]  }
 0x3cb   : > { %v1999_v6 = vpack.c.bf16 %v1983_v19, %v1975_v63  ;;  %v2001_v7 = vpack.c.bf16 %v1985_v2, %v1977_v0  ;;  %v3683_v63 = vld [vmem:[%s4599_s3 + $0x1e0] sm:$0xff]   ;;  %v3686_v19 = vld [vmem:[%s4599_s3 + $0x168] sm:$0xff]   ;;  %v1513_v41 = vadd.f32 %v4117_v52, %v4315_v18  ;;  %v1566_v20 = vadd.f32 %v4119_v53, %v4324_v29 }
 0x3cc   : > { %v2000_v30 = vpack.c.bf16 %v1984_v4, %v1976_v27  ;;  %v2002_v8 = vpack.c.bf16 %v1986_v5, %v1978_v38  ;;  %3482 = vmatpush3.bf16.msra.mxu0 %v3672_v17  ;;  %3510 = vmatpush3.bf16.msra.mxu1 %v3673_v40  ;;  %v3685_v11 = vld [vmem:[%s4599_s3 + $0x1a0] sm:$0xff]   ;;  %v1511_v17 = vadd.f32 %v4113_v50, %v4281_v12  ;;  %v3687_v2 = vld [vmem:[%s4599_s3 + $0x1e8] sm:$0xff]  }
 0x3cd   : > { %3483 = vmatprep.subr.bf16.mxu0 %v3674_v28  ;;  %3511 = vmatprep.subr.bf16.mxu1 %v3675_v3  ;;  %v1564_v40 = vadd.f32 %v4115_v51, %v4294_v24  ;;  %v1515_v50 = vadd.f32 %v4121_v54, %v4281_v12  ;;  %v1568_v3 = vadd.f32 %v4123_v55, %v4294_v24  ;;  %v3688_v55 = vld [vmem:[%s4599_s3 + $0x128] sm:$0xff]  }
 0x3ce   : > { %v1887_v44 = vpop.f32.mrb[24].mxu0  ;;  %v1940_v16 = vpop.f32.mrb[32].mxu1  ;;  %2559 = vmatprep.mubr.bf16.mxu0 %v2000_v30  ;;  %2608 = vmatprep.mubr.bf16.mxu1 %v2002_v8  ;;  %v1517_v4 = vadd.f32 %v4125_v56, %v4315_v18  ;;  %v1570_v53 = vadd.f32 %v4127_v57, %v4324_v29  ;;  %v3689_v56 = vld [vmem:[%s4599_s3 + $0x1a8] sm:$0xff]   ;;  %v3690_v57 = vld [vmem:[%s4599_s3 + $0x170] sm:$0xff]  }
 0x3cf   : > { %v4352_v22 = vmul.f32 %v1887_v44, %v1501_v14  ;;  %v4354_v23 = vmul.f32 %v1940_v16, %v1554_v10  ;;  %v1889_v25 = vpop.f32.mrb[25].mxu0  ;;  %v1942_v58 = vpop.f32.mrb[33].mxu1  ;;  %2560 = vmatmul.mubr.bf16.gmra.mrb[36].mxu0 %v1999_v6  ;;  %2609 = vmatmul.mubr.bf16.gmra.mrb[44].mxu1 %v2001_v7  ;;  %v3691_v29 = vld [vmem:[%s4599_s3 + $0x1f0] sm:$0xff]   ;;  %v3694_v44 = vld [vmem:[%s4599_s3 + $0x178] sm:$0xff]  }
 0x3d0   : > { %v1964_v46 = vmul.f32 %v1889_v25, %v1503_v32  ;;  %v1966_v47 = vmul.f32 %v1942_v58, %v1556_v15  ;;  %3484 = vmatpush3.bf16.msra.mxu0 %v3676_v31  ;;  %3512 = vmatpush3.bf16.msra.mxu1 %v3677_v9  ;;  %v1891_v59 = vpop.f32.mrb[26].mxu0  ;;  %v1944_v60 = vpop.f32.mrb[34].mxu1  ;;  %v3695_v16 = vld [vmem:[%s4599_s3 + $0x1f8] sm:$0xff]   ;;  %v3741_v58 = vmov 0.0  }
 0x3d1   : > { %v4364_v35 = vmul.f32 %v1891_v59, %v1505_v42  ;;  %v4366_v36 = vmul.f32 %v1944_v60, %v1558_v43  ;;  %v1893_v61 = vpop.f32.mrb[27].mxu0  ;;  %v1946_v49 = vpop.f32.mrb[35].mxu1  ;;  %3485 = vmatprep.subr.bf16.mxu0 %v3678_v33  ;;  %3513 = vmatprep.subr.bf16.mxu1 %v3679_v13  ;;  %v3692_v42 = vld [vmem:[%s4599_s3 + $0x130] sm:$0xff]   ;;  %v3697_v25 = vld [vmem:[%s4599_s3 + $0x1b8] sm:$0xff]  }
 0x3d2   : > { %v1972_v0 = vmul.f32 %v1893_v61, %v1507_v21  ;;  %v1974_v1 = vmul.f32 %v1946_v49, %v1560_v45  ;;  %v3693_v43 = vld [vmem:[%s4599_s3 + $0x1b0] sm:$0xff]   ;;  %v3696_v21 = vld [vmem:[%s4599_s3 + $0x138] sm:$0xff]  }
 0x3d3   : > { %v1995_v26 = vpack.c.bf16 %v4364_v35, %v4352_v22  ;;  %v1997_v37 = vpack.c.bf16 %v4366_v36, %v4354_v23  ;;  %v4448_v22 = vld [vmem:[#allocation3] sm:$0xff]  ;;  %v3699_v23 = vld [vmem:[%s3892_s29] sm:$0xff]   ;;  %v4453_v45 = vld [vmem:[#allocation3 + $0x8] sm:$0xff] }
 0x3d4   : > { %v1996_v27 = vpack.c.bf16 %v1972_v0, %v1964_v46  ;;  %v1998_v38 = vpack.c.bf16 %v1974_v1, %v1966_v47  ;;  %3486 = vmatpush3.bf16.msra.mxu0 %v3680_v48  ;;  %3514 = vmatpush3.bf16.msra.mxu1 %v3681_v34  ;;  %v3700_v46 = vld [vmem:[%s3892_s29 + $0x8] sm:$0xff]  }
 0x3d5   : > { %3487 = vmatprep.subr.bf16.mxu0 %v3682_v62  ;;  %3515 = vmatprep.subr.bf16.mxu1 %v3683_v63 }
 0x3d6   : > { %v1897_v51 = vpop.f32.mrb[28].mxu0  ;;  %v1950_v28 = vpop.f32.mrb[36].mxu1  ;;  %2649 = vmatprep.mubr.bf16.mxu0 %v1996_v27  ;;  %2698 = vmatprep.mubr.bf16.mxu1 %v1998_v38 }
 0x3d7   : > { %v1979_v5 = vmul.f32 %v1897_v51, %v1511_v17  ;;  %v1981_v6 = vmul.f32 %v1950_v28, %v1564_v40  ;;  %v1899_v7 = vpop.f32.mrb[29].mxu0  ;;  %v1952_v52 = vpop.f32.mrb[37].mxu1  ;;  %2772 = vrot.lane.b32.xlu0 %v4448_v22, %s3743_s10 }
 0x3d8   : > { %v1980_v30 = vmul.f32 %v1899_v7, %v1513_v41  ;;  %v1982_v8 = vmul.f32 %v1952_v52, %v1566_v20  ;;  %3488 = vmatpush3.bf16.msra.mxu0 %v3684_v39  ;;  %3516 = vmatpush3.bf16.msra.mxu1 %v3685_v11  ;;  %v1901_v54 = vpop.f32.mrb[30].mxu0  ;;  %v1954_v12 = vpop.f32.mrb[38].mxu1 }
 0x3d9   : > { %v1987_v24 = vmul.f32 %v1901_v54, %v1515_v50  ;;  %v1989_v18 = vmul.f32 %v1954_v12, %v1568_v3  ;;  %v1903_v31 = vpop.f32.mrb[31].mxu0  ;;  %v1956_v9 = vpop.f32.mrb[39].mxu1  ;;  %3489 = vmatprep.subr.bf16.mxu0 %v3686_v19  ;;  %3517 = vmatprep.subr.bf16.mxu1 %v3687_v2 }
 0x3da   : > { %v1988_v14 = vmul.f32 %v1903_v31, %v1517_v4  ;;  %v1990_v10 = vmul.f32 %v1956_v9, %v1570_v53 }
 0x3db   : > { %v2003_v32 = vpack.c.bf16 %v1987_v24, %v1979_v5  ;;  %v2005_v33 = vpack.c.bf16 %v1989_v18, %v1981_v6  ;;  %2774 = vrot.lane.b32.xlu0 %v4453_v45, %s3743_s10 }
 0x3dc   : > { %v2004_v13 = vpack.c.bf16 %v1988_v14, %v1980_v30  ;;  %v2006_v15 = vpack.c.bf16 %v1990_v10, %v1982_v8  ;;  %3490 = vmatpush3.bf16.msra.mxu0 %v3688_v55  ;;  %3518 = vmatpush3.bf16.msra.mxu1 %v3689_v56 }
 0x3dd   : > { %3491 = vmatprep.subr.bf16.mxu0 %v3690_v57  ;;  %3519 = vmatprep.subr.bf16.mxu1 %v3691_v29 }
 0x3e0   : > { %3492 = vmatpush3.bf16.msra.mxu0 %v3692_v42  ;;  %3520 = vmatpush3.bf16.msra.mxu1 %v3693_v43 }
 0x3e1   : > { %3493 = vmatprep.subr.bf16.mxu0 %v3694_v44  ;;  %3521 = vmatprep.subr.bf16.mxu1 %v3695_v16 }
 0x3e4   : > { %3494 = vmatpush3.bf16.msra.mxu0 %v3696_v21  ;;  %3522 = vmatpush3.bf16.msra.mxu1 %v3697_v25 }
 0x3e5   : > { %3577 = vmatprep.subr.bf16.mxu0 %v3741_v58  ;;  %3585 = vmatprep.subr.bf16.mxu1 %v3741_v58 }
 0x3e7   : > { %2650 = vmatmul.mubr.bf16.vlgmr.msra.gmra.mrb[40].mxu0 %v1995_v26  ;;  %2699 = vmatmul.mubr.bf16.vlgmr.msra.gmra.mrb[48].mxu1 %v1997_v37 }
 0x3e8   : > { %2657 = vmatprep.mubr.bf16.mxu0 %v2004_v13  ;;  %2706 = vmatprep.mubr.bf16.mxu1 %v2006_v15 }
 0x3e9   : > { %3586 = vmatpush3.bf16.msra.mxu1 %v3699_v23 }
 0x3ea   : > { %3587 = vmatprep.subr.bf16.mxu1 %v3741_v58 }
 0x3ed   : > { %3588 = vmatpush3.bf16.msra.mxu1 %v3700_v46 }
 0x3ee   : > { %3589 = vmatprep.subr.bf16.mxu1 %v3741_v58 }
 0x3ef   : > { %2658 = vmatmul.mubr.bf16.gmra.mrb[44].mxu0 %v2003_v32  ;;  %2707 = vmatmul.mubr.bf16.gmra.mrb[52].mxu1 %v2005_v33 }
 0x3f0   : > { %3581 = vmatprep.mubr.msk.bf16.mxu0 %vm3742_vm0, %v3741_v58  ;;  %3593 = vmatprep.mubr.msk.bf16.mxu1 %vm3742_vm0, %v3741_v58 }
 0x49a   : > { %v3439_v47 = vpop.f32.mrb[32].mxu0  ;;  %v3467_v59 = vpop.f32.mrb[40].mxu1 }
 0x49b   : > { %v3440_v60 = vpop.f32.mrb[33].mxu0  ;;  %v3468_v48 = vpop.f32.mrb[41].mxu1 }
 0x49c   : > { %v3441_v34 = vadd.f32 %v3440_v60, %v3439_v47  ;;  %v3469_v35 = vadd.f32 %v3468_v48, %v3467_v59  ;;  %v3442_v36 = vpop.f32.mrb[34].mxu0  ;;  %v3470_v61 = vpop.f32.mrb[42].mxu1  ;;  %v3698_v59 = vld [vmem:[%s4600_s22] sm:$0xff]   ;;  %v3701_v60 = vld [vmem:[%s3892_s29 + $0x10] sm:$0xff]   ;;  %v3702_v48 = vld [vmem:[%s3892_s29 + $0x18] sm:$0xff]  }
 0x49d   : > { %v3443_v49 = vpop.f32.mrb[35].mxu0  ;;  %v3471_v62 = vpop.f32.mrb[43].mxu1  ;;  %3590 = vmatpush3.bf16.msra.mxu1 %v3701_v60 }
 0x49e   : > { %v2603_v63 = vadd.f32 %v3469_v35, %v3441_v34  ;;  %v3444_v0 = vadd.f32 %v3443_v49, %v3442_v36  ;;  %v3472_v1 = vadd.f32 %v3471_v62, %v3470_v61  ;;  %3591 = vmatprep.subr.bf16.mxu1 %v3741_v58  ;;  %v4471_v34 = vpop.permute.xlu0 %2772 }
 0x4a0   : > { %v2606_v26 = vadd.f32 %v3472_v1, %v3444_v0 }
 0x4a1   : > { %3592 = vmatpush3.bf16.msra.mxu1 %v3702_v48 }
 0x4a2   : > { %v3445_v37 = vpop.f32.mrb[36].mxu0  ;;  %v3473_v27 = vpop.f32.mrb[44].mxu1 }
 0x4a3   : > { %v3446_v38 = vpop.f32.mrb[37].mxu0  ;;  %v3474_v39 = vpop.f32.mrb[45].mxu1 }
 0x4a4   : > { %v3447_v11 = vadd.f32 %v3446_v38, %v3445_v37  ;;  %v3475_v17 = vadd.f32 %v3474_v39, %v3473_v27  ;;  %v3448_v40 = vpop.f32.mrb[38].mxu0  ;;  %v3476_v19 = vpop.f32.mrb[46].mxu1  ;;  %v3383_v27 = vld [vmem:[%s756_s12] ss:$0 sm:$0xff]  ;;  %s3744_s12 = smov 64  }
 0x4a5   : > { %v3449_v2 = vpop.f32.mrb[39].mxu0  ;;  %v3477_v41 = vpop.f32.mrb[47].mxu1 }
 0x4a6   : > { %v2611_v20 = vadd.f32 %v3475_v17, %v3447_v11  ;;  %v3450_v50 = vadd.f32 %v3449_v2, %v3448_v40  ;;  %v3478_v51 = vadd.f32 %v3477_v41, %v3476_v19  ;;  %v4473_v62 = vpop.permute.xlu0 %2774 }
 0x4a8   : > { %v2614_v28 = vadd.f32 %v3478_v51, %v3450_v50 }
 0x4ba   : > { %v3495_v3 = vpop.f32.mrb[40].mxu0  ;;  %v3523_v4 = vpop.f32.mrb[48].mxu1 }
 0x4bb   : > { %v3496_v5 = vpop.f32.mrb[41].mxu0  ;;  %v3524_v6 = vpop.f32.mrb[49].mxu1 }
 0x4bc   : > { %v3497_v7 = vadd.f32 %v3496_v5, %v3495_v3  ;;  %v3525_v52 = vadd.f32 %v3524_v6, %v3523_v4  ;;  %v3498_v53 = vpop.f32.mrb[42].mxu0  ;;  %v3526_v30 = vpop.f32.mrb[50].mxu1 }
 0x4bd   : > { %v3499_v8 = vpop.f32.mrb[43].mxu0  ;;  %v3527_v54 = vpop.f32.mrb[51].mxu1 }
 0x4be   : > { %v2652_v12 = vadd.f32 %v3497_v7, %v2603_v63  ;;  %v3500_v55 = vadd.f32 %v3499_v8, %v3498_v53  ;;  %v3528_v56 = vadd.f32 %v3527_v54, %v3526_v30 }
 0x4c0   : > { %v2701_v24 = vadd.f32 %v3525_v52, %v2652_v12  ;;  %v2655_v18 = vadd.f32 %v3500_v55, %v2606_v26 }
 0x4c2   : > { %v2704_v31 = vadd.f32 %v3528_v56, %v2655_v18  ;;  %v3501_v9 = vpop.f32.mrb[44].mxu0  ;;  %v3529_v57 = vpop.f32.mrb[52].mxu1 }
 0x4c3   : > { %v3502_v29 = vpop.f32.mrb[45].mxu0  ;;  %v3530_v14 = vpop.f32.mrb[53].mxu1 }
 0x4c4   : > { %v2717_v10 = vpack.c.bf16 %v2704_v31, %v2701_v24  ;;  %v3503_v32 = vadd.f32 %v3502_v29, %v3501_v9  ;;  %v3531_v33 = vadd.f32 %v3530_v14, %v3529_v57  ;;  %v3504_v13 = vpop.f32.mrb[46].mxu0  ;;  %v3532_v15 = vpop.f32.mrb[54].mxu1 }
 0x4c5   : > { %v3505_v42 = vpop.f32.mrb[47].mxu0  ;;  %v3533_v43 = vpop.f32.mrb[55].mxu1 }
 0x4c6   : > { %v2660_v44 = vadd.f32 %v3503_v32, %v2611_v20  ;;  %v3506_v16 = vadd.f32 %v3505_v42, %v3504_v13  ;;  %v3534_v21 = vadd.f32 %v3533_v43, %v3532_v15  ;;  %3578 = vmatpush3.bf16.msra.mxu0 %v2717_v10 }
 0x4c7   : > { %3579 = vmatprep.subr.bf16.mxu0 %v3741_v58 }
 0x4c8   : > { %v2709_v25 = vadd.f32 %v3531_v33, %v2660_v44  ;;  %v2663_v23 = vadd.f32 %v3506_v16, %v2614_v28 }
 0x4ca   : > { %v2712_v46 = vadd.f32 %v3534_v21, %v2663_v23 }
 0x4cc   : > { %v2718_v47 = vpack.c.bf16 %v2712_v46, %v2709_v25 }
 0x4ce   : > { %3580 = vmatpush3.bf16.msra.mxu0 %v2718_v47 }
 0x4cf   : > { %3597 = vmatprep.subr.bf16.mxu0 %v3741_v58 }
 0x4d1   : > { %3582 = vmatmul.mubr.msk.bf16.vlgmr.msra.gmra.mrb[48].mxu0 %vm1090_vm13, %v3698_v59 }
 0x4d2   : > { %3605 = vmatprep.mubr.msk.bf16.mxu0 %vm3742_vm0, %v3741_v58 }
 0x5a4   : > { %v2761_v35 = vpop.f32.mrb[48].mxu0 }
 0x5a5   : > { %v2768_v36 = vmax.f32 %v2761_v35, 0.0  ;;  %v3583_v61 = vpop.f32.mrb[49].mxu0 }
 0x5a6   : > { %v2764_v49 = vpop.f32.mrb[50].mxu0  ;;  %v3391_v61 = vld [vmem:[%s759_s5] ss:$0 sm:$0xff] }
 0x5a7   : > { %v2769_v63 = vmax.f32 %v2764_v49, 0.0  ;;  %v3584_v0 = vpop.f32.mrb[51].mxu0  ;;  %v2778_v1 = vsel %vm1090_vm13, %v2768_v36, %v4471_v34  ;;  %v3392_v36 = vld [vmem:[%s762_s11] ss:$0 sm:$0xff] }
 0x5a8   : > { %v3703_v49 = vld [vmem:[%s4601_s0] sm:$0xff]  }
 0x5a9   : > { %v2779_v26 = vsel %vm1090_vm13, %v2769_v63, %v4473_v62  ;;  %3598 = vmatpush3.bf16.msra.mxu0 %v3703_v49  ;;  %v3704_v63 = vld [vmem:[%s4601_s0 + $0x8] sm:$0xff]  }
 0x5aa   : > { %v2780_v37 = vpack.c.bf16 %v2779_v26, %v2778_v1  ;;  %3599 = vmatprep.subr.bf16.mxu0 %v3741_v58 }
 0x5ac   : > { %3594 = vmatmul.mubr.msk.bf16.vlgmr.msra.gmra.mrb[56].mxu1 %vm1353_vm14, %v2780_v37 }
 0x5ad   : > { %3600 = vmatpush3.bf16.msra.mxu0 %v3704_v63 }
 0x5ae   : > { %3601 = vmatprep.subr.bf16.mxu0 %v3741_v58 }
 0x67f   : > { %v2848_v38 = vpop.f32.mrb[56].mxu1 }
 0x680   : > { %v2849_v39 = vadd.f32 %v3383_v27, %v2848_v38  ;;  %v3595_v11 = vpop.f32.mrb[57].mxu1 }
 0x681   : > { %v2851_v17 = vpop.f32.mrb[58].mxu1  ;;  %v3706_v11 = vld [vmem:[%s4601_s0 + $0x18] sm:$0xff]  }
 0x682   : > { %2869 = vrot.lane.b32.xlu1 %v2849_v39, %s3743_s10  ;;  %v3596_v40 = vpop.f32.mrb[59].mxu1  ;;  %v2852_v19 = vadd.f32 %v3383_v27, %v2851_v17  ;;  %v3389_v2 = vmul.f32 -1.442695, %v2849_v39 }
 0x684   : > { %3707 = vpow2.f32 %v3389_v2  ;;  %v3390_v41 = vmul.f32 -1.442695, %v2852_v19 }
 0x686   : > { %2871 = vrot.lane.b32.xlu1 %v2852_v19, %s3743_s10  ;;  %3709 = vpow2.f32 %v3390_v41 }
 0x68e   : > { %v3708_v20 = vpop.eup %3707 }
 0x68f   : > { %v2861_v50 = vadd.f32 1.0, %v3708_v20 }
 0x690   : > { %v3710_v51 = vpop.eup %3709 }
 0x691   : > { %3711 = vrcp.f32 %v2861_v50  ;;  %v2862_v28 = vadd.f32 1.0, %v3710_v51 }
 0x693   : > { %3713 = vrcp.f32 %v2862_v28 }
 0x69b   : > { %v3712_v3 = vpop.eup %3711 }
 0x69c   : > { %v2889_v56 = vsub.f32 1.0, %v3712_v3  ;;  %v2901_v18 = vmul.f32 %v3712_v3, %v4471_v34 }
 0x69d   : > { %v3714_v6 = vpop.eup %3713 }
 0x69e   : > { %v2890_v57 = vsub.f32 1.0, %v3714_v6  ;;  %v2902_v14 = vmul.f32 %v3714_v6, %v4473_v62 }
 0x6f4   : > { %v2870_v4 = vpop.permute.xlu1 %2869 }
 0x6f5   : > { %v2875_v5 = vmul.f32 %v3712_v3, %v2870_v4 }
 0x6f7   : > { %2879 = vrot.lane.b32.xlu0 %v2875_v5, %s3744_s12 }
 0x6f8   : > { %v2872_v7 = vpop.permute.xlu1 %2871 }
 0x6f9   : > { %v2876_v52 = vmul.f32 %v3714_v6, %v2872_v7 }
 0x6fb   : > { %2881 = vrot.lane.b32.xlu1 %v2876_v52, %s3744_s12  ;;  %s4602_s12 = sld [smem:[#allocation15_spill]] }
 0x701   : > { %v3393_v52 = vld [vmem:[%s4602_s12] ss:$0 sm:$0xff] }
 0x769   : > { %v2880_v53 = vpop.permute.xlu0 %2879 }
 0x76a   : > { %v2885_v30 = vadd.f32 %v2880_v53, %v2849_v39  ;;  %v3705_v39 = vld [vmem:[%s4601_s0 + $0x10] sm:$0xff]  }
 0x76b   : > { %3602 = vmatpush3.bf16.msra.mxu0 %v3705_v39 }
 0x76c   : > { %3715 = vtanh.f32 %v2885_v30  ;;  %3603 = vmatprep.subr.bf16.mxu0 %v3741_v58 }
 0x76d   : > { %v2882_v8 = vpop.permute.xlu1 %2881 }
 0x76e   : > { %v2886_v54 = vadd.f32 %v2882_v8, %v2852_v19 }
 0x76f   : > { %3604 = vmatpush3.bf16.msra.mxu0 %v3706_v11 }
 0x770   : > { %3717 = vtanh.f32 %v2886_v54 }
 0x776   : > { %v3716_v12 = vpop.eup %3715 }
 0x777   : > { %2893 = vrot.lane.b32.xlu0 %v3716_v12, %s3745_s27 }
 0x77a   : > { %v3718_v55 = vpop.eup %3717 }
 0x77b   : > { %2895 = vrot.lane.b32.xlu1 %v3718_v55, %s3745_s27 }
 0x7e9   : > { %v2894_v24 = vpop.permute.xlu0 %2893 }
 0x7ea   : > { %v2899_v31 = vmul.f32 %v2894_v24, %v2889_v56 }
 0x7ec   : > { %v2903_v9 = vadd.f32 %v2901_v18, %v2899_v31 }
 0x7ed   : > { %v2896_v29 = vpop.permute.xlu1 %2895 }
 0x7ee   : > { %v2900_v10 = vmul.f32 %v2896_v29, %v2890_v57  ;;  %2907 = vrot.lane.b32.xlu0 %v2903_v9, %s3745_s27 }
 0x7f0   : > { %v2904_v32 = vadd.f32 %v2902_v14, %v2900_v10 }
 0x7f2   : > { %2909 = vrot.lane.b32.xlu1 %v2904_v32, %s3745_s27 }
 0x860   : > { %v2908_v33 = vpop.permute.xlu0 %2907 }
 0x861   : > { %v2913_v13 = vsel %vm1090_vm13, %v2908_v33, 0.0 }
 0x862   : > { %2914 = vadd.xlane.f32.xlu0 %v2913_v13 }
 0x864   : > { %v2910_v15 = vpop.permute.xlu1 %2909 }
 0x865   : > { %v2916_v42 = vsel %vm1090_vm13, %v2910_v15, 0.0 }
 0x866   : > { %2917 = vadd.xlane.f32.xlu1 %v2916_v42 }
 0x8ef   : > { %v2915_v43 = vpop.xlane.xlu0 %2914 }
 0x8f0   : > { %v2920_v44 = vmul.f32 0.03125, %v2915_v43 }
 0x8f2   : > { %v2922_v16 = vsub.f32 %v2903_v9, %v2920_v44 }
 0x8f3   : > { %v2918_v21 = vpop.xlane.xlu1 %2917 }
 0x8f4   : > { %v2921_v25 = vmul.f32 0.03125, %v2918_v21  ;;  %v2924_v23 = vmul.f32 %v2922_v16, %v2922_v16 }
 0x8f6   : > { %v2923_v46 = vsub.f32 %v2904_v32, %v2921_v25  ;;  %2928 = vrot.lane.b32.xlu0 %v2924_v23, %s3745_s27 }
 0x8f8   : > { %v2925_v47 = vmul.f32 %v2923_v46, %v2923_v46 }
 0x8fa   : > { %2930 = vrot.lane.b32.xlu1 %v2925_v47, %s3745_s27 }
 0x968   : > { %v2929_v59 = vpop.permute.xlu0 %2928 }
 0x969   : > { %v2934_v60 = vsel %vm1090_vm13, %v2929_v59, 0.0 }
 0x96a   : > { %2935 = vadd.xlane.f32.xlu0 %v2934_v60 }
 0x96c   : > { %v2931_v48 = vpop.permute.xlu1 %2930 }
 0x96d   : > { %v2937_v35 = vsel %vm1090_vm13, %v2931_v48, 0.0 }
 0x96e   : > { %2938 = vadd.xlane.f32.xlu1 %v2937_v35 }
 0x97f   : > { %2963 = vrot.lane.b32.xlu1 %v3392_v36, %s3743_s10 }
 0x980   : > { %2953 = vrot.lane.b32.xlu0 %v3391_v61, %s3743_s10 }
 0x9f7   : > { %v2936_v0 = vpop.xlane.xlu0 %2935 }
 0x9f8   : > { %v2940_v1 = vmul.f32 0.03125, %v2936_v0 }
 0x9fa   : > { %v2942_v26 = vadd.f32 1e-05, %v2940_v1 }
 0x9fb   : > { %v2939_v37 = vpop.xlane.xlu1 %2938  ;;  %v2954_v40 = vpop.permute.xlu0 %2953 }
 0x9fc   : > { %3719 = vrsqrt.f32 %v2942_v26  ;;  %v2941_v27 = vmul.f32 0.03125, %v2939_v37 }
 0x9fe   : > { %v2943_v38 = vadd.f32 1e-05, %v2941_v27 }
 0x9ff   : > { %v2964_v2 = vpop.permute.xlu1 %2963 }
 0xa00   : > { %3721 = vrsqrt.f32 %v2943_v38 }
 0xa06   : > { %v3720_v17 = vpop.eup %3719 }
 0xa07   : > { %v2946_v19 = vmul.f32 %v3720_v17, %v2922_v16 }
 0xa09   : > { %v2956_v41 = vmul.f32 %v2954_v40, %v2946_v19 }
 0xa0a   : > { %v3722_v20 = vpop.eup %3721 }
 0xa0b   : > { %v2947_v50 = vmul.f32 %v3722_v20, %v2923_v46  ;;  %v2966_v51 = vadd.f32 %v2964_v2, %v2956_v41 }
 0xa0d   : > { %v2957_v28 = vmul.f32 %v2954_v40, %v2947_v50  ;;  %2970 = vrot.lane.b32.xlu0 %v2966_v51, %s3745_s27 }
 0xa0f   : > { %v2967_v3 = vadd.f32 %v2964_v2, %v2957_v28 }
 0xa11   : > { %2972 = vrot.lane.b32.xlu1 %v2967_v3, %s3745_s27 }
 0xa7f   : > { %v2971_v58 = vpop.permute.xlu0 %2970 }
 0xa80   : > { %v2976_v5 = vsel %vm1090_vm13, %v2971_v58, %v4471_v34 }
 0xa83   : > { %v2973_v4 = vpop.permute.xlu1 %2972 }
 0xa84   : > { %v2977_v6 = vsel %vm1090_vm13, %v2973_v4, %v4473_v62 }
 0xa85   : > { %v2978_v7 = vpack.c.bf16 %v2977_v6, %v2976_v5 }
 0xa87   : > { %3606 = vmatmul.mubr.msk.bf16.vlgmr.msra.gmra.mrb[52].mxu0 %vm1353_vm14, %v2978_v7 }
 0xb5a   : > { %v3055_v53 = vpop.f32.mrb[52].mxu0 }
 0xb5b   : > { %v3056_v30 = vadd.f32 %v3393_v52, %v3055_v53  ;;  %v3607_v8 = vpop.f32.mrb[53].mxu0 }
 0xb5c   : > { %v3058_v54 = vpop.f32.mrb[54].mxu0 }
 0xb5d   : > { %v3399_v12 = vmul.f32 -1.442695, %v3056_v30  ;;  %v3059_v55 = vadd.f32 %v3393_v52, %v3058_v54  ;;  %v3608_v56 = vpop.f32.mrb[55].mxu0 }
 0xb5f   : > { %3723 = vpow2.f32 %v3399_v12  ;;  %v3400_v24 = vmul.f32 -1.442695, %v3059_v55 }
 0xb61   : > { %3725 = vpow2.f32 %v3400_v24 }
 0xb69   : > { %v3724_v34 = vpop.eup %3723 }
 0xb6a   : > { %v3068_v62 = vadd.f32 1.0, %v3724_v34 }
 0xb6b   : > { %v3726_v18 = vpop.eup %3725 }
 0xb6c   : > { %3727 = vrcp.f32 %v3068_v62  ;;  %v3069_v31 = vadd.f32 1.0, %v3726_v18 }
 0xb6e   : > { %3729 = vrcp.f32 %v3069_v31 }
 0xb76   : > { %v3728_v9 = vpop.eup %3727 }
 0xb77   : > { %v3076_v57 = vsub.f32 1.0, %v3728_v9  ;;  %v3074_v14 = vmul.f32 %v3728_v9, %v2971_v58 }
 0xb78   : > { %v3730_v29 = vpop.eup %3729 }
 0xb79   : > { %v3078_v10 = vmul.f32 %v3076_v57, %v4448_v22  ;;  %v3077_v32 = vsub.f32 1.0, %v3730_v29  ;;  %v3075_v13 = vmul.f32 %v3730_v29, %v2973_v4 }
 0xb7b   : > { %v3080_v33 = vadd.f32 %v3078_v10, %v3074_v14  ;;  %v3079_v15 = vmul.f32 %v3077_v32, %v4453_v45 }
 0xb7d   : > { %3082 = vst.msk [vmem:[#allocation2] sm:$0xff] %vm1090_vm13, %v3080_v33  ;;  %3084 = vst.msk [vmem:[%s3909_s15] sm:$0xff] %vm1090_vm13, %v3080_v33  ;;  %v3081_v42 = vadd.f32 %v3079_v15, %v3075_v13 }
 0xb7f   : > { %3083 = vst.msk [vmem:[#allocation2 + $0x8] sm:$0xff] %vm1090_vm13, %v3081_v42  ;;  %3085 = vst.msk [vmem:[%s3909_s15 + $0x8] sm:$0xff] %vm1090_vm13, %v3081_v42 }
 0xb80 PF: > { %s4603_s27 = sld [smem:[#allocation5_spill]] }
 0xb86   : > { %s32_s2 = sadd.s32 1, %s4603_s27  }
 0xb87   : > { %p29_p5 = scmp.ge.s32.totalorder %s32_s2, 4  }
 0xb89   :  { %31 = sbr.rel (!%p29_p5) target bundleno = 14 (0xe), region = 163 }

</bundles_post_ra>
